<compile_context>
chip_gen: v5e
topology: v5e:2x2
jax: 0.10.0
libtpu: 0.0.40
codegen_flags: <defaults>
</compile_context>

<pallas_src>
import math

import jax
import jax.numpy as jnp
from jax import lax
from jax.experimental import pallas as pl
from jax.experimental.pallas import tpu as pltpu

n_beat_fractions = 10
n_unpitched_features = 2
n_unpitched_notes = 47


def _round_up(x, m):
    return ((x + m - 1) // m) * m


# ---------------------------------------------------------------------------
# Shared LSTM cell math (PyTorch gate order i, f, g, o), given pre-summed
# gate pre-activations.  One full-width sigmoid + one full-width tanh + a
# *hoisted* lane mask instead of four quarter-width slices -> full-lane EUP
# utilization when hid < 128.  `is_g` must be built once outside any unrolled
# loop (JAX does not CSE broadcast_in_dim / iota).
# ---------------------------------------------------------------------------
def _lstm_cell(gates, c, hid, is_g):
    act = jnp.where(is_g, jnp.tanh(gates), jax.nn.sigmoid(gates))
    i_g = act[..., 0 * hid:1 * hid]
    f_g = act[..., 1 * hid:2 * hid]
    g_g = act[..., 2 * hid:3 * hid]
    o_g = act[..., 3 * hid:4 * hid]
    c_new = f_g * c + i_g * g_g
    h_new = o_g * jnp.tanh(c_new)
    return h_new, c_new


# ---------------------------------------------------------------------------
# Kernel A: fused  y = leaky_relu(x @ W_lin + b_lin)
#                  gates_x = y @ W_ih + (b_ih + b_hh)
# Row-tiled ("parallel") with a lane-dense (4*beat_size >= 128) output.
# Input, W_lin and W_ih are bf16; accumulation + elementwise in f32
# (v5e-safe: no bf16 VPU/EUP required).  HBM-bandwidth bound, so the bf16
# input stream is the main lever.
# ---------------------------------------------------------------------------
def _fused_proj_kernel(x_ref, wl_ref, bl_ref, wih_ref, bg_ref, o_ref):
    y = jnp.dot(x_ref[...], wl_ref[...], preferred_element_type=jnp.float32)
    y = y + bl_ref[...]
    y = jnp.where(y > 0, y, 0.01 * y)          # F.leaky_relu default slope
    g = jnp.dot(y.astype(jnp.bfloat16), wih_ref[...],
                preferred_element_type=jnp.float32)
    o_ref[...] = g + bg_ref[...]


def pallas_fused_projection(x2d, w_lin, b_lin, w_ih, gate_b, *, row_block=None):
    n, k = x2d.shape
    hid = w_lin.shape[1]
    if row_block is None:
        # bf16 input: a (1024, 940) double-buffered tile is ~3.6 MiB, well
        # under the 16 MiB default scoped VMEM on v5e and the v7x budget.
        row_block = n if n <= 1024 else 1024
    grid = (pl.cdiv(n, row_block),)
    return pl.pallas_call(
        _fused_proj_kernel,
        out_shape=jax.ShapeDtypeStruct((n, 4 * hid), jnp.float32),
        grid_spec=pltpu.PrefetchScalarGridSpec(
            num_scalar_prefetch=0,
            grid=grid,
            in_specs=[
                pl.BlockSpec((row_block, k), lambda i: (i, 0)),
                pl.BlockSpec((k, hid), lambda i: (0, 0)),
                pl.BlockSpec((1, hid), lambda i: (0, 0)),
                pl.BlockSpec((hid, 4 * hid), lambda i: (0, 0)),
                pl.BlockSpec((1, 4 * hid), lambda i: (0, 0)),
            ],
            out_specs=pl.BlockSpec((row_block, 4 * hid), lambda i: (i, 0)),
        ),
        compiler_params=pltpu.CompilerParams(
            dimension_semantics=("parallel",)),
    )(x2d, w_lin, b_lin, w_ih, gate_b)


# ---------------------------------------------------------------------------
# Kernel B: beats LSTM recurrence.  Input gates (x@W_ih + biases) are already
# precomputed by Kernel A, so each step is only  gates_x[:, t] + h @ W_hh.
#   gates_x view: [M, T*4H]  (block (tm, T*4H), full time axis per m-tile)
#   output:       [M, T*H]   (lane-dense, one writeback DMA per m-tile)
# grid = (m_tiles,) "parallel"; the T recurrence is an in-kernel unrolled
# loop with h/c as value carries (no scratch, no per-step grid overhead).
# ---------------------------------------------------------------------------
def _beats_lstm_kernel(gx_ref, whh_ref, o_ref):
    hid = whh_ref.shape[0]
    tm = o_ref.shape[0]
    n_steps = o_ref.shape[1] // hid

    whh = whh_ref[...]                                    # bf16 (hid, 4*hid)
    # Hoisted gate mask (built once, reused by every unrolled step).
    lanes = lax.broadcasted_iota(jnp.int32, (tm, 4 * hid), 1)
    is_g = (lanes >= 2 * hid) & (lanes < 3 * hid)

    h = jnp.zeros((tm, hid), jnp.float32)
    c = jnp.zeros((tm, hid), jnp.float32)
    # TODO(synk): static unroll over the beats axis; for very long BEATS move
    # the time loop back onto a grid axis (or lax.fori_loop) to bound VMEM.
    for t in range(n_steps):
        gates = gx_ref[:, t * 4 * hid:(t + 1) * 4 * hid] + jnp.dot(
            h.astype(jnp.bfloat16), whh, preferred_element_type=jnp.float32)
        h, c = _lstm_cell(gates, c, hid, is_g)
        # Static-slice store into the lane-dense output tile; the actual HBM
        # writeback is one dense (tm, T*hid) DMA per m-tile.
        o_ref[:, t * hid:(t + 1) * hid] = h


def pallas_beats_lstm(gx_mk, w_hh, *, n_steps, tm=None):
    m, cols = gx_mk.shape
    hid = w_hh.shape[0]
    assert cols == n_steps * 4 * hid
    assert (4 * hid) % 128 == 0, "hidden size must be a multiple of 32"
    if tm is None:
        if m <= 8:
            tm = m
        else:
            # >=2 m-tiles so v7x's second TensorCore gets work; cap at 256 so
            # the per-tile (tm, T*4H) slab + live values stay small on every
            # generation (v7x has 64 MiB VMEM).
            tm = min(256, _round_up(pl.cdiv(m, 2), 8))
    grid = (pl.cdiv(m, tm),)
    return pl.pallas_call(
        _beats_lstm_kernel,
        out_shape=jax.ShapeDtypeStruct((m, n_steps * hid), jnp.float32),
        grid_spec=pltpu.PrefetchScalarGridSpec(
            num_scalar_prefetch=0,
            grid=grid,
            in_specs=[
                pl.BlockSpec((tm, n_steps * 4 * hid), lambda i: (i, 0)),
                pl.BlockSpec((hid, 4 * hid), lambda i: (0, 0)),
            ],
            out_specs=pl.BlockSpec((tm, n_steps * hid), lambda i: (i, 0)),
        ),
        compiler_params=pltpu.CompilerParams(
            dimension_semantics=("parallel",)),
    )(gx_mk, w_hh)


# ---------------------------------------------------------------------------
# Kernel: combine(x, dim=1) from the reference, with x laid out as [C, N]
# (N = B*bars*beat_size flattened per channel):
#   norm_c = sqrt(1 + sum over ALL non-channel dims of x[c]**2)   (safe=True)
#   out    = sum_c x[c] * norm_c / sum_c norm_c
# Global per-channel reduction + single scalar denominator (exact torch
# semantics); tiny, one un-gridded kernel.
# ---------------------------------------------------------------------------
def _combine_kernel(x_ref, o_ref):
    x = x_ref[...]                                        # [C, N]
    s = jnp.sum(x * x, axis=1, keepdims=True)             # [C, 1]
    norm = jnp.sqrt(1.0 + s)
    o_ref[...] = jnp.sum(x * norm, axis=0, keepdims=True) / jnp.sum(norm)


def pallas_combine_dim0(x_cn):
    _, n = x_cn.shape
    return pl.pallas_call(
        _combine_kernel,
        out_shape=jax.ShapeDtypeStruct((1, n), jnp.float32),
    )(x_cn)


# ---------------------------------------------------------------------------
# Kernel C: bidirectional bars LSTM, BOTH directions fused in one kernel body
# (single grid point).  Input gates (x@W_ih + bias) per direction are
# precomputed (tiny XLA einsum), so each step is gates[d, t] + h_d @ W_hh_d.
# The backward direction walks the time axis in reverse inside the same
# unrolled loop, so on 1-TC chips (v5e/v6e) the serial trip count is T (not
# 2T); on v7x the two per-step dots are independent and overlap on the MXU.
# Output is a single lane-dense (B, T*bar_size) block written with static
# column slices -> one dense writeback, no dynamic store addresses.
# ---------------------------------------------------------------------------
def _bars_bilstm_kernel(gx_ref, whh_ref, o_ref):
    t_len = gx_ref.shape[1]
    bsz = gx_ref.shape[2]
    half = whh_ref.shape[1]

    whh_f = whh_ref[0]                                    # bf16 (half, 4*half)
    whh_b = whh_ref[1]
    lanes = lax.broadcasted_iota(jnp.int32, (bsz, 4 * half), 1)
    is_g = (lanes >= 2 * half) & (lanes < 3 * half)       # hoisted gate mask

    z = jnp.zeros((bsz, half), jnp.float32)
    h_f, c_f, h_b, c_b = z, z, z, z
    # TODO(synk): static unroll over bars; fine for modest bar counts.
    for t in range(t_len):
        tb = t_len - 1 - t
        g_f = gx_ref[0, t] + jnp.dot(h_f.astype(jnp.bfloat16), whh_f,
                                     preferred_element_type=jnp.float32)
        g_b = gx_ref[1, tb] + jnp.dot(h_b.astype(jnp.bfloat16), whh_b,
                                      preferred_element_type=jnp.float32)
        h_f, c_f = _lstm_cell(g_f, c_f, half, is_g)
        h_b, c_b = _lstm_cell(g_b, c_b, half, is_g)
        # Column layout per bar index s: [fwd_s (half) | bwd_s (half)].
        o_ref[:, (2 * t) * half:(2 * t + 1) * half] = h_f
        o_ref[:, (2 * tb + 1) * half:(2 * tb + 2) * half] = h_b


def pallas_bars_bilstm(gx_bars, w_hh2):
    d, t, bsz, four_half = gx_bars.shape
    half = w_hh2.shape[1]
    assert d == 2 and four_half == 4 * half
    return pl.pallas_call(
        _bars_bilstm_kernel,
        out_shape=jax.ShapeDtypeStruct((bsz, t * 2 * half), jnp.float32),
    )(gx_bars, w_hh2)


# ---------------------------------------------------------------------------
# Parameter init (deterministic, PyTorch-style uniform(-1/sqrt(fan_in), ...)).
# Canonical layout: linear weight rows follow the module's post-transpose
# (beat_fraction, feature, note) input ordering; LSTM weights pre-transposed
# to [in, 4H], gate biases pre-summed (b_ih + b_hh).
# ---------------------------------------------------------------------------
def init_params(key, beat_size, bar_size):
    assert bar_size % 2 == 0
    in_features = n_beat_fractions * n_unpitched_notes * n_unpitched_features
    half = bar_size // 2
    keys = jax.random.split(key, 14)

    def u(k, shape, fan_in):
        bound = 1.0 / math.sqrt(fan_in)
        return jax.random.uniform(k, shape, jnp.float32, -bound, bound)

    return {
        "lin_w": u(keys[0], (in_features, beat_size), in_features),
        "lin_b": u(keys[1], (1, beat_size), in_features),
        "beats_wih": u(keys[2], (beat_size, 4 * beat_size), beat_size),
        "beats_whh": u(keys[3], (beat_size, 4 * beat_size), beat_size),
        "beats_b": (u(keys[4], (1, 4 * beat_size), beat_size)
                    + u(keys[5], (1, 4 * beat_size), beat_size)),
        "bars_f_wih": u(keys[6], (beat_size, 4 * half), half),
        "bars_f_whh": u(keys[7], (half, 4 * half), half),
        "bars_f_b": (u(keys[8], (1, 4 * half), half)
                     + u(keys[9], (1, 4 * half), half)),
        "bars_b_wih": u(keys[10], (beat_size, 4 * half), half),
        "bars_b_whh": u(keys[11], (half, 4 * half), half),
        "bars_b_b": (u(keys[12], (1, 4 * half), half)
                     + u(keys[13], (1, 4 * half), half)),
    }


def pack_params(p):
    """One-time transform into kernel-friendly layout.

    * Permute lin_w rows so the kernel consumes `channels` in its native
      (beat_fraction, note, feature) memory order -- this absorbs the module's
      channels.transpose(-1, -2) into the weight and removes the runtime
      transpose of the largest tensor.
    * Cast matmul weights feeding the MXU to bf16 (accumulation stays f32),
      including the recurrent W_hh used on the serial critical paths.
    * Stack the two bars-LSTM directions for the fused bidirectional kernel.
    """
    bf = jnp.arange(n_beat_fractions)[:, None, None]
    note = jnp.arange(n_unpitched_notes)[None, :, None]
    feat = jnp.arange(n_unpitched_features)[None, None, :]
    # native index (bf, note, feat) -> canonical row (bf, feat, note)
    perm = (bf * (n_unpitched_features * n_unpitched_notes)
            + feat * n_unpitched_notes + note).reshape(-1)
    return {
        "lin_w": p["lin_w"][perm].astype(jnp.bfloat16),
        "lin_b": p["lin_b"],
        "beats_wih": p["beats_wih"].astype(jnp.bfloat16),
        "beats_whh": p["beats_whh"].astype(jnp.bfloat16),
        "beats_gate_b": p["beats_b"],
        "bars_wih": jnp.stack([p["bars_f_wih"], p["bars_b_wih"]]),
        "bars_whh": jnp.stack([p["bars_f_whh"],
                               p["bars_b_whh"]]).astype(jnp.bfloat16),
        "bars_b": jnp.stack([p["bars_f_b"], p["bars_b_b"]]),
    }


# ---------------------------------------------------------------------------
# Forward pass (glue in JAX, hot paths in Pallas).
# ---------------------------------------------------------------------------
def unpitched_channels_encoder_forward(channels, kp):
    B, C, BARS, BEATS, BF, NOTES, FEAT = channels.shape
    beat = kp["lin_w"].shape[1]
    half = kp["bars_whh"].shape[1]
    in_f = BF * NOTES * FEAT

    # 1) fused linear + leaky_relu + beats-LSTM input projection (+ gate bias).
    #    bf16 input stream (no runtime transpose: weight rows were permuted
    #    at pack time).  Pass bf16 channels to make the cast a no-op.
    x2d = channels.reshape(B * C * BARS * BEATS, in_f).astype(jnp.bfloat16)
    gates_x = pallas_fused_projection(
        x2d, kp["lin_w"], kp["lin_b"], kp["beats_wih"], kp["beats_gate_b"])

    # 2) beats LSTM recurrence, distributed over (B, C, bars); lane-dense
    #    [M, BEATS*beat] output (no time-major transpose needed).
    M = B * C * BARS
    gx_mk = gates_x.reshape(M, BEATS * 4 * beat)           # free view
    beats_flat = pallas_beats_lstm(gx_mk, kp["beats_whh"], n_steps=BEATS)
    beats = beats_flat.reshape(B, C, BARS, BEATS, beat)    # free reshape
    last = beats_flat[:, (BEATS - 1) * beat:]               # [M, beat]

    # 3) combine over the channel axis (global per-channel norm + scalar
    #    denominator, exactly matching torch's combine(x, dim=1)).
    last4 = last.reshape(B, C, BARS, beat)
    x_cn = jnp.transpose(last4, (1, 0, 2, 3)).reshape(C, B * BARS * beat)
    comb = pallas_combine_dim0(x_cn).reshape(B, BARS, beat)

    # 4) bidirectional bars LSTM: input projection hoisted (tiny einsum), then
    #    one Pallas kernel running both directions fused in a single body.
    gx_bars = (jnp.einsum("bti,dij->dtbj", comb, kp["bars_wih"])
               + kp["bars_b"][:, None])                     # [2, BARS, B, 4*half]
    bars = pallas_bars_bilstm(gx_bars, kp["bars_whh"])      # [B, BARS*2*half]
    bars = bars.reshape(B, BARS, 2 * half)                  # free reshape

    return beats, bars


# ---------------------------------------------------------------------------
# Pure-JAX f32 reference (mirrors the torch module) for a tolerance check.
# ---------------------------------------------------------------------------
def _reference_forward(channels, p):
    B, C, BARS, BEATS, BF, NOTES, FEAT = channels.shape
    beat = p["lin_w"].shape[1]
    half = p["bars_f_whh"].shape[0]

    def cell(h, c, gates, hid):
        i = jax.nn.sigmoid(gates[..., :hid])
        f = jax.nn.sigmoid(gates[..., hid:2 * hid])
        g = jnp.tanh(gates[..., 2 * hid:3 * hid])
        o = jax.nn.sigmoid(gates[..., 3 * hid:])
        c = f * c + i * g
        return o * jnp.tanh(c), c

    x = jnp.swapaxes(channels, -1, -2)                     # [..., feat, note]
    x = x.reshape(B, C, BARS, BEATS, BF * FEAT * NOTES)
    y = x @ p["lin_w"] + p["lin_b"]
    y = jnp.where(y > 0, y, 0.01 * y)

    M = B * C * BARS
    ym = y.reshape(M, BEATS, beat)
    h = jnp.zeros((M, beat)); c = jnp.zeros((M, beat))
    outs = []
    for t in range(BEATS):
        gates = ym[:, t] @ p["beats_wih"] + h @ p["beats_whh"] + p["beats_b"]
        h, c = cell(h, c, gates, beat)
        outs.append(h)
    beats_ref = jnp.stack(outs, axis=1).reshape(B, C, BARS, BEATS, beat)

    last = beats_ref[:, :, :, -1]                          # [B, C, BARS, beat]
    sq = jnp.sum(last ** 2, axis=(0, 2, 3), keepdims=True)
    norm = jnp.sqrt(1.0 + sq)
    comb = jnp.sum(last * norm, axis=1) / jnp.sum(norm)    # [B, BARS, beat]

    hf = jnp.zeros((B, half)); cf = jnp.zeros((B, half))
    hb = jnp.zeros((B, half)); cb = jnp.zeros((B, half))
    outf = [None] * BARS; outb = [None] * BARS
    for t in range(BARS):
        tb = BARS - 1 - t
        gf = comb[:, t] @ p["bars_f_wih"] + hf @ p["bars_f_whh"] + p["bars_f_b"]
        hf, cf = cell(hf, cf, gf, half)
        outf[t] = hf
        gb = comb[:, tb] @ p["bars_b_wih"] + hb @ p["bars_b_whh"] + p["bars_b_b"]
        hb, cb = cell(hb, cb, gb, half)
        outb[tb] = hb
    bars_ref = jnp.concatenate(
        [jnp.stack(outf, axis=1), jnp.stack(outb, axis=1)], axis=-1)
    return beats_ref, bars_ref


if __name__ == "__main__":
    beat_size = 32
    bar_size = 32
    B, C, BARS, BEATS = 2, 2, 3, 4

    key = jax.random.PRNGKey(0)
    k_in, k_par = jax.random.split(key)
    channels = jax.random.normal(
        k_in,
        (B, C, BARS, BEATS, n_beat_fractions, n_unpitched_notes,
         n_unpitched_features),
        dtype=jnp.float32)

    params = init_params(k_par, beat_size, bar_size)
    kparams = pack_params(params)

    fwd = jax.jit(unpitched_channels_encoder_forward)
    beats, bars = fwd(channels, kparams)
    beats = jax.block_until_ready(beats)
    bars = jax.block_until_ready(bars)

    assert beats.shape == (B, C, BARS, BEATS, beat_size), beats.shape
    assert bars.shape == (B, BARS, bar_size), bars.shape
    assert bool(jnp.all(jnp.isfinite(beats))) and bool(jnp.all(jnp.isfinite(bars)))

    # Numerical check against the f32 pure-JAX reference (tolerance accounts
    # for bf16 weights / activations feeding f32-accumulated MXU matmuls).
    beats_ref, bars_ref = _reference_forward(channels, params)
    assert float(jnp.max(jnp.abs(beats - beats_ref))) < 1e-1
    assert float(jnp.max(jnp.abs(bars - bars_ref))) < 1e-1

    print("KERNEL_OK")
</pallas_src>

<mosaic_0001>
module attributes {stable_mosaic.version = 11 : i64} {
  func.func @_fused_proj_kernel(%arg0: i32, %arg1: memref<48x940xbf16, #tpu.memory_space<vmem>>, %arg2: memref<940x32xbf16, #tpu.memory_space<vmem>>, %arg3: memref<1x32xf32, #tpu.memory_space<vmem>>, %arg4: memref<32x128xbf16, #tpu.memory_space<vmem>>, %arg5: memref<1x128xf32, #tpu.memory_space<vmem>>, %arg6: memref<48x128xf32, #tpu.memory_space<vmem>>) attributes {dimension_semantics = [#tpu.dimension_semantics<parallel>], iteration_bounds = array<i64: 1>, scalar_prefetch = 0 : i64, scratch_operands = 0 : i64, tpu.core_type = #tpu.core_type<tc>, window_params = [{transform_indices = @transform_0, window_bounds = array<i64: 48, 940>}, {pipeline_mode = #tpu.pipeline_mode<synchronous>, transform_indices = @transform_1, window_bounds = array<i64: 940, 32>}, {pipeline_mode = #tpu.pipeline_mode<synchronous>, transform_indices = @transform_2, window_bounds = array<i64: 1, 32>}, {pipeline_mode = #tpu.pipeline_mode<synchronous>, transform_indices = @transform_3, window_bounds = array<i64: 32, 128>}, {pipeline_mode = #tpu.pipeline_mode<synchronous>, transform_indices = @transform_4, window_bounds = array<i64: 1, 128>}, {transform_indices = @transform_5, window_bounds = array<i64: 48, 128>}]} {
    %c0 = arith.constant 0 : index
    %c0_0 = arith.constant 0 : index
    %0 = vector.load %arg1[%c0, %c0_0] : memref<48x940xbf16, #tpu.memory_space<vmem>>, vector<48x940xbf16>
    %c0_1 = arith.constant 0 : index
    %c0_2 = arith.constant 0 : index
    %1 = vector.load %arg2[%c0_1, %c0_2] : memref<940x32xbf16, #tpu.memory_space<vmem>>, vector<940x32xbf16>
    %cst = arith.constant dense<0.000000e+00> : vector<48x32xf32>
    %2 = tpu.matmul %0, %1, %cst {dimension_numbers = #tpu.dot_dimension_numbers<[1], [0], [0], [1], [0, 0, 1, 1], [], []>} : vector<48x940xbf16>, vector<940x32xbf16>, vector<48x32xf32> -> vector<48x32xf32>
    %c0_3 = arith.constant 0 : index
    %c0_4 = arith.constant 0 : index
    %3 = vector.load %arg3[%c0_3, %c0_4] : memref<1x32xf32, #tpu.memory_space<vmem>>, vector<1x32xf32>
    %4 = vector.broadcast %3 : vector<1x32xf32> to vector<48x32xf32>
    %5 = arith.addf %2, %4 : vector<48x32xf32>
    %cst_5 = arith.constant 0.000000e+00 : f32
    %6 = vector.broadcast %cst_5 : f32 to vector<48x32xf32>
    %7 = arith.cmpf ogt, %5, %6 : vector<48x32xf32>
    %cst_6 = arith.constant 0.00999999977 : f32
    %8 = vector.broadcast %cst_6 : f32 to vector<48x32xf32>
    %9 = arith.mulf %8, %5 : vector<48x32xf32>
    %10 = arith.select %7, %5, %9 : vector<48x32xi1>, vector<48x32xf32>
    %11 = arith.truncf %10 : vector<48x32xf32> to vector<48x32xbf16>
    %c0_7 = arith.constant 0 : index
    %c0_8 = arith.constant 0 : index
    %12 = vector.load %arg4[%c0_7, %c0_8] : memref<32x128xbf16, #tpu.memory_space<vmem>>, vector<32x128xbf16>
    %cst_9 = arith.constant dense<0.000000e+00> : vector<48x128xf32>
    %13 = tpu.matmul %11, %12, %cst_9 {dimension_numbers = #tpu.dot_dimension_numbers<[1], [0], [0], [1], [0, 0, 1, 1], [], []>} : vector<48x32xbf16>, vector<32x128xbf16>, vector<48x128xf32> -> vector<48x128xf32>
    %c0_10 = arith.constant 0 : index
    %c0_11 = arith.constant 0 : index
    %14 = vector.load %arg5[%c0_10, %c0_11] : memref<1x128xf32, #tpu.memory_space<vmem>>, vector<1x128xf32>
    %15 = vector.broadcast %14 : vector<1x128xf32> to vector<48x128xf32>
    %16 = arith.addf %13, %15 : vector<48x128xf32>
    %c0_12 = arith.constant 0 : index
    %c0_13 = arith.constant 0 : index
    %17 = vector.load %arg6[%c0_12, %c0_13] : memref<48x128xf32, #tpu.memory_space<vmem>>, vector<48x128xf32>
    tpu.vector_store %arg6[%c0_12, %c0_13], %16 {strides = array<i32>} : memref<48x128xf32, #tpu.memory_space<vmem>>, vector<48x128xf32>,
    return
  }
  func.func @transform_0(%arg0: i32) -> (i32, i32) {
    %c0_i32 = arith.constant 0 : i32
    %c0_i32_0 = arith.constant 0 : i32
    return %arg0, %c0_i32 : i32, i32
  }
  func.func @transform_1(%arg0: i32) -> (i32, i32) {
    %c0_i32 = arith.constant 0 : i32
    %c0_i32_0 = arith.constant 0 : i32
    %c0_i32_1 = arith.constant 0 : i32
    return %c0_i32, %c0_i32_0 : i32, i32
  }
  func.func @transform_2(%arg0: i32) -> (i32, i32) {
    %c0_i32 = arith.constant 0 : i32
    %c0_i32_0 = arith.constant 0 : i32
    %c0_i32_1 = arith.constant 0 : i32
    return %c0_i32, %c0_i32_0 : i32, i32
  }
  func.func @transform_3(%arg0: i32) -> (i32, i32) {
    %c0_i32 = arith.constant 0 : i32
    %c0_i32_0 = arith.constant 0 : i32
    %c0_i32_1 = arith.constant 0 : i32
    return %c0_i32, %c0_i32_0 : i32, i32
  }
  func.func @transform_4(%arg0: i32) -> (i32, i32) {
    %c0_i32 = arith.constant 0 : i32
    %c0_i32_0 = arith.constant 0 : i32
    %c0_i32_1 = arith.constant 0 : i32
    return %c0_i32, %c0_i32_0 : i32, i32
  }
  func.func @transform_5(%arg0: i32) -> (i32, i32) {
    %c0_i32 = arith.constant 0 : i32
    %c0_i32_0 = arith.constant 0 : i32
    return %arg0, %c0_i32 : i32, i32
  }
}

module attributes {stable_mosaic.version = 11 : i64} {
  func.func @_beats_lstm_kernel(%arg0: i32, %arg1: memref<8x512xf32, #tpu.memory_space<vmem>>, %arg2: memref<32x128xbf16, #tpu.memory_space<vmem>>, %arg3: memref<8x128xf32, #tpu.memory_space<vmem>>) attributes {dimension_semantics = [#tpu.dimension_semantics<parallel>], iteration_bounds = array<i64: 2>, scalar_prefetch = 0 : i64, scratch_operands = 0 : i64, tpu.core_type = #tpu.core_type<tc>, window_params = [{transform_indices = @transform_0, window_bounds = array<i64: 8, 512>}, {pipeline_mode = #tpu.pipeline_mode<synchronous>, transform_indices = @transform_1, window_bounds = array<i64: 32, 128>}, {transform_indices = @transform_2, window_bounds = array<i64: 8, 128>}]} {
    %c0 = arith.constant 0 : index
    %c0_0 = arith.constant 0 : index
    %0 = vector.load %arg2[%c0, %c0_0] : memref<32x128xbf16, #tpu.memory_space<vmem>>, vector<32x128xbf16>
    %1 = tpu.iota {dimensions = array<i32: 1>} : vector<8x128xi32>
    %c64_i32 = arith.constant 64 : i32
    %2 = vector.broadcast %c64_i32 : i32 to vector<8x128xi32>
    %3 = arith.cmpi sge, %1, %2 : vector<8x128xi32>
    %c96_i32 = arith.constant 96 : i32
    %4 = vector.broadcast %c96_i32 : i32 to vector<8x128xi32>
    %5 = arith.cmpi slt, %1, %4 : vector<8x128xi32>
    %6 = arith.andi %3, %5 : vector<8x128xi1>
    %cst = arith.constant 0.000000e+00 : f32
    %7 = vector.broadcast %cst : f32 to vector<8x32xf32>
    %cst_1 = arith.constant 0.000000e+00 : f32
    %8 = vector.broadcast %cst_1 : f32 to vector<8x32xf32>
    %c0_2 = arith.constant 0 : index
    %c0_3 = arith.constant 0 : index
    %9 = vector.load %arg1[%c0_2, %c0_3] : memref<8x512xf32, #tpu.memory_space<vmem>>, vector<8x128xf32>
    %10 = arith.truncf %7 : vector<8x32xf32> to vector<8x32xbf16>
    %cst_4 = arith.constant dense<0.000000e+00> : vector<8x128xf32>
    %11 = tpu.matmul %10, %0, %cst_4 {dimension_numbers = #tpu.dot_dimension_numbers<[1], [0], [0], [1], [0, 0, 1, 1], [], []>} : vector<8x32xbf16>, vector<32x128xbf16>, vector<8x128xf32> -> vector<8x128xf32>
    %12 = arith.addf %9, %11 : vector<8x128xf32>
    %13 = math.tanh %12 : vector<8x128xf32>
    %14 = arith.negf %12 : vector<8x128xf32>
    %15 = math.exp %14 : vector<8x128xf32>
    %cst_5 = arith.constant 1.000000e+00 : f32
    %16 = vector.broadcast %cst_5 : f32 to vector<8x128xf32>
    %17 = arith.addf %16, %15 : vector<8x128xf32>
    %18 = arith.divf %16, %17 : vector<8x128xf32>
    %19 = arith.select %6, %13, %18 : vector<8x128xi1>, vector<8x128xf32>
    %20 = vector.extract_strided_slice %19 {offsets = [0, 0], sizes = [8, 32], strides = [1, 1]} : vector<8x128xf32> to vector<8x32xf32>
    %21 = vector.extract_strided_slice %19 {offsets = [0, 32], sizes = [8, 32], strides = [1, 1]} : vector<8x128xf32> to vector<8x32xf32>
    %22 = vector.extract_strided_slice %19 {offsets = [0, 64], sizes = [8, 32], strides = [1, 1]} : vector<8x128xf32> to vector<8x32xf32>
    %23 = vector.extract_strided_slice %19 {offsets = [0, 96], sizes = [8, 32], strides = [1, 1]} : vector<8x128xf32> to vector<8x32xf32>
    %24 = arith.mulf %21, %8 : vector<8x32xf32>
    %25 = arith.mulf %20, %22 : vector<8x32xf32>
    %26 = arith.addf %24, %25 : vector<8x32xf32>
    %27 = math.tanh %26 : vector<8x32xf32>
    %28 = arith.mulf %23, %27 : vector<8x32xf32>
    %c0_6 = arith.constant 0 : index
    %c0_7 = arith.constant 0 : index
    %29 = vector.load %arg3[%c0_6, %c0_7] : memref<8x128xf32, #tpu.memory_space<vmem>>, vector<8x32xf32>
    tpu.vector_store %arg3[%c0_6, %c0_7], %28 {strides = array<i32>} : memref<8x128xf32, #tpu.memory_space<vmem>>, vector<8x32xf32>,
    %c0_8 = arith.constant 0 : index
    %c128 = arith.constant 128 : index
    %30 = vector.load %arg1[%c0_8, %c128] : memref<8x512xf32, #tpu.memory_space<vmem>>, vector<8x128xf32>
    %31 = arith.truncf %28 : vector<8x32xf32> to vector<8x32xbf16>
    %cst_9 = arith.constant dense<0.000000e+00> : vector<8x128xf32>
    %32 = tpu.matmul %31, %0, %cst_9 {dimension_numbers = #tpu.dot_dimension_numbers<[1], [0], [0], [1], [0, 0, 1, 1], [], []>} : vector<8x32xbf16>, vector<32x128xbf16>, vector<8x128xf32> -> vector<8x128xf32>
    %33 = arith.addf %30, %32 : vector<8x128xf32>
    %34 = math.tanh %33 : vector<8x128xf32>
    %35 = arith.negf %33 : vector<8x128xf32>
    %36 = math.exp %35 : vector<8x128xf32>
    %cst_10 = arith.constant 1.000000e+00 : f32
    %37 = vector.broadcast %cst_10 : f32 to vector<8x128xf32>
    %38 = arith.addf %37, %36 : vector<8x128xf32>
    %39 = arith.divf %37, %38 : vector<8x128xf32>
    %40 = arith.select %6, %34, %39 : vector<8x128xi1>, vector<8x128xf32>
    %41 = vector.extract_strided_slice %40 {offsets = [0, 0], sizes = [8, 32], strides = [1, 1]} : vector<8x128xf32> to vector<8x32xf32>
    %42 = vector.extract_strided_slice %40 {offsets = [0, 32], sizes = [8, 32], strides = [1, 1]} : vector<8x128xf32> to vector<8x32xf32>
    %43 = vector.extract_strided_slice %40 {offsets = [0, 64], sizes = [8, 32], strides = [1, 1]} : vector<8x128xf32> to vector<8x32xf32>
    %44 = vector.extract_strided_slice %40 {offsets = [0, 96], sizes = [8, 32], strides = [1, 1]} : vector<8x128xf32> to vector<8x32xf32>
    %45 = arith.mulf %42, %26 : vector<8x32xf32>
    %46 = arith.mulf %41, %43 : vector<8x32xf32>
    %47 = arith.addf %45, %46 : vector<8x32xf32>
    %48 = math.tanh %47 : vector<8x32xf32>
    %49 = arith.mulf %44, %48 : vector<8x32xf32>
    %c0_11 = arith.constant 0 : index
    %c32 = arith.constant 32 : index
    %50 = vector.load %arg3[%c0_11, %c32] : memref<8x128xf32, #tpu.memory_space<vmem>>, vector<8x32xf32>
    tpu.vector_store %arg3[%c0_11, %c32], %49 {strides = array<i32>} : memref<8x128xf32, #tpu.memory_space<vmem>>, vector<8x32xf32>,
    %c0_12 = arith.constant 0 : index
    %c256 = arith.constant 256 : index
    %51 = vector.load %arg1[%c0_12, %c256] : memref<8x512xf32, #tpu.memory_space<vmem>>, vector<8x128xf32>
    %52 = arith.truncf %49 : vector<8x32xf32> to vector<8x32xbf16>
    %cst_13 = arith.constant dense<0.000000e+00> : vector<8x128xf32>
    %53 = tpu.matmul %52, %0, %cst_13 {dimension_numbers = #tpu.dot_dimension_numbers<[1], [0], [0], [1], [0, 0, 1, 1], [], []>} : vector<8x32xbf16>, vector<32x128xbf16>, vector<8x128xf32> -> vector<8x128xf32>
    %54 = arith.addf %51, %53 : vector<8x128xf32>
    %55 = math.tanh %54 : vector<8x128xf32>
    %56 = arith.negf %54 : vector<8x128xf32>
    %57 = math.exp %56 : vector<8x128xf32>
    %cst_14 = arith.constant 1.000000e+00 : f32
    %58 = vector.broadcast %cst_14 : f32 to vector<8x128xf32>
    %59 = arith.addf %58, %57 : vector<8x128xf32>
    %60 = arith.divf %58, %59 : vector<8x128xf32>
    %61 = arith.select %6, %55, %60 : vector<8x128xi1>, vector<8x128xf32>
    %62 = vector.extract_strided_slice %61 {offsets = [0, 0], sizes = [8, 32], strides = [1, 1]} : vector<8x128xf32> to vector<8x32xf32>
    %63 = vector.extract_strided_slice %61 {offsets = [0, 32], sizes = [8, 32], strides = [1, 1]} : vector<8x128xf32> to vector<8x32xf32>
    %64 = vector.extract_strided_slice %61 {offsets = [0, 64], sizes = [8, 32], strides = [1, 1]} : vector<8x128xf32> to vector<8x32xf32>
    %65 = vector.extract_strided_slice %61 {offsets = [0, 96], sizes = [8, 32], strides = [1, 1]} : vector<8x128xf32> to vector<8x32xf32>
    %66 = arith.mulf %63, %47 : vector<8x32xf32>
    %67 = arith.mulf %62, %64 : vector<8x32xf32>
    %68 = arith.addf %66, %67 : vector<8x32xf32>
    %69 = math.tanh %68 : vector<8x32xf32>
    %70 = arith.mulf %65, %69 : vector<8x32xf32>
    %c0_15 = arith.constant 0 : index
    %c64 = arith.constant 64 : index
    %71 = vector.load %arg3[%c0_15, %c64] : memref<8x128xf32, #tpu.memory_space<vmem>>, vector<8x32xf32>
    tpu.vector_store %arg3[%c0_15, %c64], %70 {strides = array<i32>} : memref<8x128xf32, #tpu.memory_space<vmem>>, vector<8x32xf32>,
    %c0_16 = arith.constant 0 : index
    %c384 = arith.constant 384 : index
    %72 = vector.load %arg1[%c0_16, %c384] : memref<8x512xf32, #tpu.memory_space<vmem>>, vector<8x128xf32>
    %73 = arith.truncf %70 : vector<8x32xf32> to vector<8x32xbf16>
    %cst_17 = arith.constant dense<0.000000e+00> : vector<8x128xf32>
    %74 = tpu.matmul %73, %0, %cst_17 {dimension_numbers = #tpu.dot_dimension_numbers<[1], [0], [0], [1], [0, 0, 1, 1], [], []>} : vector<8x32xbf16>, vector<32x128xbf16>, vector<8x128xf32> -> vector<8x128xf32>
    %75 = arith.addf %72, %74 : vector<8x128xf32>
    %76 = math.tanh %75 : vector<8x128xf32>
    %77 = arith.negf %75 : vector<8x128xf32>
    %78 = math.exp %77 : vector<8x128xf32>
    %cst_18 = arith.constant 1.000000e+00 : f32
    %79 = vector.broadcast %cst_18 : f32 to vector<8x128xf32>
    %80 = arith.addf %79, %78 : vector<8x128xf32>
    %81 = arith.divf %79, %80 : vector<8x128xf32>
    %82 = arith.select %6, %76, %81 : vector<8x128xi1>, vector<8x128xf32>
    %83 = vector.extract_strided_slice %82 {offsets = [0, 0], sizes = [8, 32], strides = [1, 1]} : vector<8x128xf32> to vector<8x32xf32>
    %84 = vector.extract_strided_slice %82 {offsets = [0, 32], sizes = [8, 32], strides = [1, 1]} : vector<8x128xf32> to vector<8x32xf32>
    %85 = vector.extract_strided_slice %82 {offsets = [0, 64], sizes = [8, 32], strides = [1, 1]} : vector<8x128xf32> to vector<8x32xf32>
    %86 = vector.extract_strided_slice %82 {offsets = [0, 96], sizes = [8, 32], strides = [1, 1]} : vector<8x128xf32> to vector<8x32xf32>
    %87 = arith.mulf %84, %68 : vector<8x32xf32>
    %88 = arith.mulf %83, %85 : vector<8x32xf32>
    %89 = arith.addf %87, %88 : vector<8x32xf32>
    %90 = math.tanh %89 : vector<8x32xf32>
    %91 = arith.mulf %86, %90 : vector<8x32xf32>
    %c0_19 = arith.constant 0 : index
    %c96 = arith.constant 96 : index
    %92 = vector.load %arg3[%c0_19, %c96] : memref<8x128xf32, #tpu.memory_space<vmem>>, vector<8x32xf32>
    tpu.vector_store %arg3[%c0_19, %c96], %91 {strides = array<i32>} : memref<8x128xf32, #tpu.memory_space<vmem>>, vector<8x32xf32>,
    return
  }
  func.func @transform_0(%arg0: i32) -> (i32, i32) {
    %c0_i32 = arith.constant 0 : i32
    %c0_i32_0 = arith.constant 0 : i32
    return %arg0, %c0_i32 : i32, i32
  }
  func.func @transform_1(%arg0: i32) -> (i32, i32) {
    %c0_i32 = arith.constant 0 : i32
    %c0_i32_0 = arith.constant 0 : i32
    %c0_i32_1 = arith.constant 0 : i32
    return %c0_i32, %c0_i32_0 : i32, i32
  }
  func.func @transform_2(%arg0: i32) -> (i32, i32) {
    %c0_i32 = arith.constant 0 : i32
    %c0_i32_0 = arith.constant 0 : i32
    return %arg0, %c0_i32 : i32, i32
  }
}

module attributes {stable_mosaic.version = 11 : i64} {
  func.func @_combine_kernel(%arg0: memref<2x192xf32, #tpu.memory_space<vmem>>, %arg1: memref<1x192xf32, #tpu.memory_space<vmem>>) attributes {dimension_semantics = [], scalar_prefetch = 0 : i64, scratch_operands = 0 : i64, tpu.core_type = #tpu.core_type<tc>} {
    %c0 = arith.constant 0 : index
    %c0_0 = arith.constant 0 : index
    %0 = vector.load %arg0[%c0, %c0_0] : memref<2x192xf32, #tpu.memory_space<vmem>>, vector<2x192xf32>
    %1 = arith.mulf %0, %0 : vector<2x192xf32>
    %cst = arith.constant dense<0.000000e+00> : vector<2xf32>
    %2 = vector.multi_reduction <add>, %1, %cst [1] : vector<2x192xf32> to vector<2xf32>
    %3 = vector.shape_cast %2 : vector<2xf32> to vector<2x1xf32>
    %cst_1 = arith.constant 1.000000e+00 : f32
    %4 = vector.broadcast %cst_1 : f32 to vector<2x1xf32>
    %5 = arith.addf %4, %3 : vector<2x1xf32>
    %6 = math.sqrt %5 : vector<2x1xf32>
    %7 = vector.broadcast %6 : vector<2x1xf32> to vector<2x192xf32>
    %8 = arith.mulf %0, %7 : vector<2x192xf32>
    %cst_2 = arith.constant dense<0.000000e+00> : vector<192xf32>
    %9 = vector.multi_reduction <add>, %8, %cst_2 [0] : vector<2x192xf32> to vector<192xf32>
    %10 = vector.shape_cast %9 : vector<192xf32> to vector<1x192xf32>
    %11 = vector.shape_cast %6 : vector<2x1xf32> to vector<1x2x1xf32>
    %cst_3 = arith.constant dense<0.000000e+00> : vector<1xf32>
    %12 = vector.multi_reduction <add>, %11, %cst_3 [1, 2] : vector<1x2x1xf32> to vector<1xf32>
    %13 = vector.shape_cast %12 : vector<1xf32> to vector<1x1x1xf32>
    %14 = vector.extract %13[0, 0, 0] : f32 from vector<1x1x1xf32>
    %15 = vector.broadcast %14 : f32 to vector<1x192xf32>
    %16 = arith.divf %10, %15 : vector<1x192xf32>
    %c0_4 = arith.constant 0 : index
    %c0_5 = arith.constant 0 : index
    %17 = vector.load %arg1[%c0_4, %c0_5] : memref<1x192xf32, #tpu.memory_space<vmem>>, vector<1x192xf32>
    tpu.vector_store %arg1[%c0_4, %c0_5], %16 {strides = array<i32>} : memref<1x192xf32, #tpu.memory_space<vmem>>, vector<1x192xf32>,
    return
  }
}

module attributes {stable_mosaic.version = 11 : i64} {
  func.func @_bars_bilstm_kernel(%arg0: memref<2x3x2x64xf32, #tpu.memory_space<vmem>>, %arg1: memref<2x16x64xbf16, #tpu.memory_space<vmem>>, %arg2: memref<2x96xf32, #tpu.memory_space<vmem>>) attributes {dimension_semantics = [], scalar_prefetch = 0 : i64, scratch_operands = 0 : i64, tpu.core_type = #tpu.core_type<tc>} {
    %c0 = arith.constant 0 : index
    %c0_0 = arith.constant 0 : index
    %c0_1 = arith.constant 0 : index
    %0 = vector.load %arg1[%c0, %c0_0, %c0_1] : memref<2x16x64xbf16, #tpu.memory_space<vmem>>, vector<1x16x64xbf16>
    %1 = vector.shape_cast %0 : vector<1x16x64xbf16> to vector<16x64xbf16>
    %c1 = arith.constant 1 : index
    %c0_2 = arith.constant 0 : index
    %c0_3 = arith.constant 0 : index
    %2 = vector.load %arg1[%c1, %c0_2, %c0_3] : memref<2x16x64xbf16, #tpu.memory_space<vmem>>, vector<1x16x64xbf16>
    %3 = vector.shape_cast %2 : vector<1x16x64xbf16> to vector<16x64xbf16>
    %4 = tpu.iota {dimensions = array<i32: 1>} : vector<2x64xi32>
    %c32_i32 = arith.constant 32 : i32
    %5 = vector.broadcast %c32_i32 : i32 to vector<2x64xi32>
    %6 = arith.cmpi sge, %4, %5 : vector<2x64xi32>
    %c48_i32 = arith.constant 48 : i32
    %7 = vector.broadcast %c48_i32 : i32 to vector<2x64xi32>
    %8 = arith.cmpi slt, %4, %7 : vector<2x64xi32>
    %9 = arith.andi %6, %8 : vector<2x64xi1>
    %cst = arith.constant 0.000000e+00 : f32
    %10 = vector.broadcast %cst : f32 to vector<2x16xf32>
    %c0_4 = arith.constant 0 : index
    %c0_5 = arith.constant 0 : index
    %c0_6 = arith.constant 0 : index
    %c0_7 = arith.constant 0 : index
    %11 = vector.load %arg0[%c0_4, %c0_5, %c0_6, %c0_7] : memref<2x3x2x64xf32, #tpu.memory_space<vmem>>, vector<1x1x2x64xf32>
    %12 = vector.shape_cast %11 : vector<1x1x2x64xf32> to vector<2x64xf32>
    %13 = arith.truncf %10 : vector<2x16xf32> to vector<2x16xbf16>
    %cst_8 = arith.constant dense<0.000000e+00> : vector<2x64xf32>
    %14 = tpu.matmul %13, %1, %cst_8 {dimension_numbers = #tpu.dot_dimension_numbers<[1], [0], [0], [1], [0, 0, 1, 1], [], []>} : vector<2x16xbf16>, vector<16x64xbf16>, vector<2x64xf32> -> vector<2x64xf32>
    %15 = arith.addf %12, %14 : vector<2x64xf32>
    %c1_9 = arith.constant 1 : index
    %c2 = arith.constant 2 : index
    %c0_10 = arith.constant 0 : index
    %c0_11 = arith.constant 0 : index
    %16 = vector.load %arg0[%c1_9, %c2, %c0_10, %c0_11] : memref<2x3x2x64xf32, #tpu.memory_space<vmem>>, vector<1x1x2x64xf32>
    %17 = vector.shape_cast %16 : vector<1x1x2x64xf32> to vector<2x64xf32>
    %18 = arith.truncf %10 : vector<2x16xf32> to vector<2x16xbf16>
    %cst_12 = arith.constant dense<0.000000e+00> : vector<2x64xf32>
    %19 = tpu.matmul %18, %3, %cst_12 {dimension_numbers = #tpu.dot_dimension_numbers<[1], [0], [0], [1], [0, 0, 1, 1], [], []>} : vector<2x16xbf16>, vector<16x64xbf16>, vector<2x64xf32> -> vector<2x64xf32>
    %20 = arith.addf %17, %19 : vector<2x64xf32>
    %21 = math.tanh %15 : vector<2x64xf32>
    %22 = arith.negf %15 : vector<2x64xf32>
    %23 = math.exp %22 : vector<2x64xf32>
    %cst_13 = arith.constant 1.000000e+00 : f32
    %24 = vector.broadcast %cst_13 : f32 to vector<2x64xf32>
    %25 = arith.addf %24, %23 : vector<2x64xf32>
    %26 = arith.divf %24, %25 : vector<2x64xf32>
    %27 = arith.select %9, %21, %26 : vector<2x64xi1>, vector<2x64xf32>
    %28 = vector.extract_strided_slice %27 {offsets = [0, 0], sizes = [2, 16], strides = [1, 1]} : vector<2x64xf32> to vector<2x16xf32>
    %29 = vector.extract_strided_slice %27 {offsets = [0, 16], sizes = [2, 16], strides = [1, 1]} : vector<2x64xf32> to vector<2x16xf32>
    %30 = vector.extract_strided_slice %27 {offsets = [0, 32], sizes = [2, 16], strides = [1, 1]} : vector<2x64xf32> to vector<2x16xf32>
    %31 = vector.extract_strided_slice %27 {offsets = [0, 48], sizes = [2, 16], strides = [1, 1]} : vector<2x64xf32> to vector<2x16xf32>
    %32 = arith.mulf %29, %10 : vector<2x16xf32>
    %33 = arith.mulf %28, %30 : vector<2x16xf32>
    %34 = arith.addf %32, %33 : vector<2x16xf32>
    %35 = math.tanh %34 : vector<2x16xf32>
    %36 = arith.mulf %31, %35 : vector<2x16xf32>
    %37 = math.tanh %20 : vector<2x64xf32>
    %38 = arith.negf %20 : vector<2x64xf32>
    %39 = math.exp %38 : vector<2x64xf32>
    %cst_14 = arith.constant 1.000000e+00 : f32
    %40 = vector.broadcast %cst_14 : f32 to vector<2x64xf32>
    %41 = arith.addf %40, %39 : vector<2x64xf32>
    %42 = arith.divf %40, %41 : vector<2x64xf32>
    %43 = arith.select %9, %37, %42 : vector<2x64xi1>, vector<2x64xf32>
    %44 = vector.extract_strided_slice %43 {offsets = [0, 0], sizes = [2, 16], strides = [1, 1]} : vector<2x64xf32> to vector<2x16xf32>
    %45 = vector.extract_strided_slice %43 {offsets = [0, 16], sizes = [2, 16], strides = [1, 1]} : vector<2x64xf32> to vector<2x16xf32>
    %46 = vector.extract_strided_slice %43 {offsets = [0, 32], sizes = [2, 16], strides = [1, 1]} : vector<2x64xf32> to vector<2x16xf32>
    %47 = vector.extract_strided_slice %43 {offsets = [0, 48], sizes = [2, 16], strides = [1, 1]} : vector<2x64xf32> to vector<2x16xf32>
    %48 = arith.mulf %45, %10 : vector<2x16xf32>
    %49 = arith.mulf %44, %46 : vector<2x16xf32>
    %50 = arith.addf %48, %49 : vector<2x16xf32>
    %51 = math.tanh %50 : vector<2x16xf32>
    %52 = arith.mulf %47, %51 : vector<2x16xf32>
    %c0_15 = arith.constant 0 : index
    %c0_16 = arith.constant 0 : index
    %53 = vector.load %arg2[%c0_15, %c0_16] : memref<2x96xf32, #tpu.memory_space<vmem>>, vector<2x16xf32>
    tpu.vector_store %arg2[%c0_15, %c0_16], %36 {strides = array<i32>} : memref<2x96xf32, #tpu.memory_space<vmem>>, vector<2x16xf32>,
    %c0_17 = arith.constant 0 : index
    %c80 = arith.constant 80 : index
    %54 = vector.load %arg2[%c0_17, %c80] : memref<2x96xf32, #tpu.memory_space<vmem>>, vector<2x16xf32>
    tpu.vector_store %arg2[%c0_17, %c80], %52 {strides = array<i32>} : memref<2x96xf32, #tpu.memory_space<vmem>>, vector<2x16xf32>,
    %c0_18 = arith.constant 0 : index
    %c1_19 = arith.constant 1 : index
    %c0_20 = arith.constant 0 : index
    %c0_21 = arith.constant 0 : index
    %55 = vector.load %arg0[%c0_18, %c1_19, %c0_20, %c0_21] : memref<2x3x2x64xf32, #tpu.memory_space<vmem>>, vector<1x1x2x64xf32>
    %56 = vector.shape_cast %55 : vector<1x1x2x64xf32> to vector<2x64xf32>
    %57 = arith.truncf %36 : vector<2x16xf32> to vector<2x16xbf16>
    %cst_22 = arith.constant dense<0.000000e+00> : vector<2x64xf32>
    %58 = tpu.matmul %57, %1, %cst_22 {dimension_numbers = #tpu.dot_dimension_numbers<[1], [0], [0], [1], [0, 0, 1, 1], [], []>} : vector<2x16xbf16>, vector<16x64xbf16>, vector<2x64xf32> -> vector<2x64xf32>
    %59 = arith.addf %56, %58 : vector<2x64xf32>
    %c1_23 = arith.constant 1 : index
    %c1_24 = arith.constant 1 : index
    %c0_25 = arith.constant 0 : index
    %c0_26 = arith.constant 0 : index
    %60 = vector.load %arg0[%c1_23, %c1_24, %c0_25, %c0_26] : memref<2x3x2x64xf32, #tpu.memory_space<vmem>>, vector<1x1x2x64xf32>
    %61 = vector.shape_cast %60 : vector<1x1x2x64xf32> to vector<2x64xf32>
    %62 = arith.truncf %52 : vector<2x16xf32> to vector<2x16xbf16>
    %cst_27 = arith.constant dense<0.000000e+00> : vector<2x64xf32>
    %63 = tpu.matmul %62, %3, %cst_27 {dimension_numbers = #tpu.dot_dimension_numbers<[1], [0], [0], [1], [0, 0, 1, 1], [], []>} : vector<2x16xbf16>, vector<16x64xbf16>, vector<2x64xf32> -> vector<2x64xf32>
    %64 = arith.addf %61, %63 : vector<2x64xf32>
    %65 = math.tanh %59 : vector<2x64xf32>
    %66 = arith.negf %59 : vector<2x64xf32>
    %67 = math.exp %66 : vector<2x64xf32>
    %cst_28 = arith.constant 1.000000e+00 : f32
    %68 = vector.broadcast %cst_28 : f32 to vector<2x64xf32>
    %69 = arith.addf %68, %67 : vector<2x64xf32>
    %70 = arith.divf %68, %69 : vector<2x64xf32>
    %71 = arith.select %9, %65, %70 : vector<2x64xi1>, vector<2x64xf32>
    %72 = vector.extract_strided_slice %71 {offsets = [0, 0], sizes = [2, 16], strides = [1, 1]} : vector<2x64xf32> to vector<2x16xf32>
    %73 = vector.extract_strided_slice %71 {offsets = [0, 16], sizes = [2, 16], strides = [1, 1]} : vector<2x64xf32> to vector<2x16xf32>
    %74 = vector.extract_strided_slice %71 {offsets = [0, 32], sizes = [2, 16], strides = [1, 1]} : vector<2x64xf32> to vector<2x16xf32>
    %75 = vector.extract_strided_slice %71 {offsets = [0, 48], sizes = [2, 16], strides = [1, 1]} : vector<2x64xf32> to vector<2x16xf32>
    %76 = arith.mulf %73, %34 : vector<2x16xf32>
    %77 = arith.mulf %72, %74 : vector<2x16xf32>
    %78 = arith.addf %76, %77 : vector<2x16xf32>
    %79 = math.tanh %78 : vector<2x16xf32>
    %80 = arith.mulf %75, %79 : vector<2x16xf32>
    %81 = math.tanh %64 : vector<2x64xf32>
    %82 = arith.negf %64 : vector<2x64xf32>
    %83 = math.exp %82 : vector<2x64xf32>
    %cst_29 = arith.constant 1.000000e+00 : f32
    %84 = vector.broadcast %cst_29 : f32 to vector<2x64xf32>
    %85 = arith.addf %84, %83 : vector<2x64xf32>
    %86 = arith.divf %84, %85 : vector<2x64xf32>
    %87 = arith.select %9, %81, %86 : vector<2x64xi1>, vector<2x64xf32>
    %88 = vector.extract_strided_slice %87 {offsets = [0, 0], sizes = [2, 16], strides = [1, 1]} : vector<2x64xf32> to vector<2x16xf32>
    %89 = vector.extract_strided_slice %87 {offsets = [0, 16], sizes = [2, 16], strides = [1, 1]} : vector<2x64xf32> to vector<2x16xf32>
    %90 = vector.extract_strided_slice %87 {offsets = [0, 32], sizes = [2, 16], strides = [1, 1]} : vector<2x64xf32> to vector<2x16xf32>
    %91 = vector.extract_strided_slice %87 {offsets = [0, 48], sizes = [2, 16], strides = [1, 1]} : vector<2x64xf32> to vector<2x16xf32>
    %92 = arith.mulf %89, %50 : vector<2x16xf32>
    %93 = arith.mulf %88, %90 : vector<2x16xf32>
    %94 = arith.addf %92, %93 : vector<2x16xf32>
    %95 = math.tanh %94 : vector<2x16xf32>
    %96 = arith.mulf %91, %95 : vector<2x16xf32>
    %c0_30 = arith.constant 0 : index
    %c32 = arith.constant 32 : index
    %97 = vector.load %arg2[%c0_30, %c32] : memref<2x96xf32, #tpu.memory_space<vmem>>, vector<2x16xf32>
    tpu.vector_store %arg2[%c0_30, %c32], %80 {strides = array<i32>} : memref<2x96xf32, #tpu.memory_space<vmem>>, vector<2x16xf32>,
    %c0_31 = arith.constant 0 : index
    %c48 = arith.constant 48 : index
    %98 = vector.load %arg2[%c0_31, %c48] : memref<2x96xf32, #tpu.memory_space<vmem>>, vector<2x16xf32>
    tpu.vector_store %arg2[%c0_31, %c48], %96 {strides = array<i32>} : memref<2x96xf32, #tpu.memory_space<vmem>>, vector<2x16xf32>,
    %c0_32 = arith.constant 0 : index
    %c2_33 = arith.constant 2 : index
    %c0_34 = arith.constant 0 : index
    %c0_35 = arith.constant 0 : index
    %99 = vector.load %arg0[%c0_32, %c2_33, %c0_34, %c0_35] : memref<2x3x2x64xf32, #tpu.memory_space<vmem>>, vector<1x1x2x64xf32>
    %100 = vector.shape_cast %99 : vector<1x1x2x64xf32> to vector<2x64xf32>
    %101 = arith.truncf %80 : vector<2x16xf32> to vector<2x16xbf16>
    %cst_36 = arith.constant dense<0.000000e+00> : vector<2x64xf32>
    %102 = tpu.matmul %101, %1, %cst_36 {dimension_numbers = #tpu.dot_dimension_numbers<[1], [0], [0], [1], [0, 0, 1, 1], [], []>} : vector<2x16xbf16>, vector<16x64xbf16>, vector<2x64xf32> -> vector<2x64xf32>
    %103 = arith.addf %100, %102 : vector<2x64xf32>
    %c1_37 = arith.constant 1 : index
    %c0_38 = arith.constant 0 : index
    %c0_39 = arith.constant 0 : index
    %c0_40 = arith.constant 0 : index
    %104 = vector.load %arg0[%c1_37, %c0_38, %c0_39, %c0_40] : memref<2x3x2x64xf32, #tpu.memory_space<vmem>>, vector<1x1x2x64xf32>
    %105 = vector.shape_cast %104 : vector<1x1x2x64xf32> to vector<2x64xf32>
    %106 = arith.truncf %96 : vector<2x16xf32> to vector<2x16xbf16>
    %cst_41 = arith.constant dense<0.000000e+00> : vector<2x64xf32>
    %107 = tpu.matmul %106, %3, %cst_41 {dimension_numbers = #tpu.dot_dimension_numbers<[1], [0], [0], [1], [0, 0, 1, 1], [], []>} : vector<2x16xbf16>, vector<16x64xbf16>, vector<2x64xf32> -> vector<2x64xf32>
    %108 = arith.addf %105, %107 : vector<2x64xf32>
    %109 = math.tanh %103 : vector<2x64xf32>
    %110 = arith.negf %103 : vector<2x64xf32>
    %111 = math.exp %110 : vector<2x64xf32>
    %cst_42 = arith.constant 1.000000e+00 : f32
    %112 = vector.broadcast %cst_42 : f32 to vector<2x64xf32>
    %113 = arith.addf %112, %111 : vector<2x64xf32>
    %114 = arith.divf %112, %113 : vector<2x64xf32>
    %115 = arith.select %9, %109, %114 : vector<2x64xi1>, vector<2x64xf32>
    %116 = vector.extract_strided_slice %115 {offsets = [0, 0], sizes = [2, 16], strides = [1, 1]} : vector<2x64xf32> to vector<2x16xf32>
    %117 = vector.extract_strided_slice %115 {offsets = [0, 16], sizes = [2, 16], strides = [1, 1]} : vector<2x64xf32> to vector<2x16xf32>
    %118 = vector.extract_strided_slice %115 {offsets = [0, 32], sizes = [2, 16], strides = [1, 1]} : vector<2x64xf32> to vector<2x16xf32>
    %119 = vector.extract_strided_slice %115 {offsets = [0, 48], sizes = [2, 16], strides = [1, 1]} : vector<2x64xf32> to vector<2x16xf32>
    %120 = arith.mulf %117, %78 : vector<2x16xf32>
    %121 = arith.mulf %116, %118 : vector<2x16xf32>
    %122 = arith.addf %120, %121 : vector<2x16xf32>
    %123 = math.tanh %122 : vector<2x16xf32>
    %124 = arith.mulf %119, %123 : vector<2x16xf32>
    %125 = math.tanh %108 : vector<2x64xf32>
    %126 = arith.negf %108 : vector<2x64xf32>
    %127 = math.exp %126 : vector<2x64xf32>
    %cst_43 = arith.constant 1.000000e+00 : f32
    %128 = vector.broadcast %cst_43 : f32 to vector<2x64xf32>
    %129 = arith.addf %128, %127 : vector<2x64xf32>
    %130 = arith.divf %128, %129 : vector<2x64xf32>
    %131 = arith.select %9, %125, %130 : vector<2x64xi1>, vector<2x64xf32>
    %132 = vector.extract_strided_slice %131 {offsets = [0, 0], sizes = [2, 16], strides = [1, 1]} : vector<2x64xf32> to vector<2x16xf32>
    %133 = vector.extract_strided_slice %131 {offsets = [0, 16], sizes = [2, 16], strides = [1, 1]} : vector<2x64xf32> to vector<2x16xf32>
    %134 = vector.extract_strided_slice %131 {offsets = [0, 32], sizes = [2, 16], strides = [1, 1]} : vector<2x64xf32> to vector<2x16xf32>
    %135 = vector.extract_strided_slice %131 {offsets = [0, 48], sizes = [2, 16], strides = [1, 1]} : vector<2x64xf32> to vector<2x16xf32>
    %136 = arith.mulf %133, %94 : vector<2x16xf32>
    %137 = arith.mulf %132, %134 : vector<2x16xf32>
    %138 = arith.addf %136, %137 : vector<2x16xf32>
    %139 = math.tanh %138 : vector<2x16xf32>
    %140 = arith.mulf %135, %139 : vector<2x16xf32>
    %c0_44 = arith.constant 0 : index
    %c64 = arith.constant 64 : index
    %141 = vector.load %arg2[%c0_44, %c64] : memref<2x96xf32, #tpu.memory_space<vmem>>, vector<2x16xf32>
    tpu.vector_store %arg2[%c0_44, %c64], %124 {strides = array<i32>} : memref<2x96xf32, #tpu.memory_space<vmem>>, vector<2x16xf32>,
    %c0_45 = arith.constant 0 : index
    %c16 = arith.constant 16 : index
    %142 = vector.load %arg2[%c0_45, %c16] : memref<2x96xf32, #tpu.memory_space<vmem>>, vector<2x16xf32>
    tpu.vector_store %arg2[%c0_45, %c16], %140 {strides = array<i32>} : memref<2x96xf32, #tpu.memory_space<vmem>>, vector<2x16xf32>,
    return
  }
}

</mosaic_0001>

<bundles_post_ra>
// kernel: unpitched_channels_encoder_forward.5
= control target key start
LH: loop header
LB: loop body
LE: loop exit
PB: predicated region body
PF: predicated region fallthrough
CT: control target
= control target key end

     0   :  { %s572_s9 = smov 0   ;;  %s654_s0 = inlined_call_operand.vmem [shape: f32[12,512], index: 0, kind: input, shape index: {}]   ;;  %s655_s1 = inlined_call_operand.vmem [shape: bf16[32,128], index: 1, kind: input, shape index: {}]   ;;  %s656_s2 = inlined_call_operand.vmem [shape: f32[12,128], index: 2, kind: output, shape index: {}]  }
   0x1 LB: > { %s473_s10 = sadd.s32 4294967295, %s551_s9   ;;  %p477_p0 = scmp.ge.s32.totalorder %s551_s9, 1  ;;  %s551_s9 = sphi %s572_s9, %s12_s9  }
   0x2   : > { %p112_p1 = scmp.lt.s32.totalorder %s551_s9, 3 }
   0x4   : > { %p113_p2 = pnand %p477_p0, %p112_p1 }
   0x5   : > { %p133_p3 = scmp.lt.s32.totalorder (!%p113_p2), %s473_s10, 1  ;;  %s554_s19 = smov (!%p113_p2), 64  }
   0x6   : > { %116 = sbr.rel (%p113_p2) target bundleno = 2347 (0x92b), region = 28  ;;  %s555_s20 = smov (!%p113_p2), 32  }
   0x7   : > { %s556_s21 = smov (!%p113_p2), 96  }
   0xb   : > { %v500_v0 = vld [vmem:[%s655_s1 + $0x8] sm:$0xff]  ;;  %v499_v1 = vld [vmem:[%s655_s1] sm:$0xff]  ;;  %v553_v2 = vmov 0   ;;  %s660_s10 = smov (!%p133_p3, %s473_s10), 1  ;;  %v147_v10 = vlaneseq  ;;  %vm165_vm7 = vcmask 261120  }
   0xc   : > { %175 = vmatpush.bf16.msra.mxu0 %v500_v0  ;;  %240 = vmatpush.bf16.msra.mxu1 %v500_v0  ;;  %s498_s15 = sshll.u32 %s660_s10, 5  ;;  %s480_s22 = sshll.u32 %s660_s10, 3 }
   0xd   : > { %306 = vmatpush.bf16.msra.mxu2 %v500_v0  ;;  %372 = vmatpush.bf16.msra.mxu3 %v500_v0  ;;  %s592_s18 = scalar_lea.vmem %s654_s0, %s498_s15  ;;  %v148_v12 = vand.u32 127, %v147_v10  ;;  %s636_s25 = scalar_lea.vmem %s656_s2, %s480_s22 }
   0xe   : > { %v152_v3 = vld [vmem:[%s592_s18] sm:$0xff]  ;;  %v226_v35 = vld [vmem:[%s592_s18 + $0x8] sm:$0xff]  ;;  %v292_v0 = vld [vmem:[%s592_s18 + $0x10] sm:$0xff] }
   0xf   : > { %vm149_vm0 = vcmp.ge.s32.totalorder %v148_v12, 64  ;;  %vm150_vm1 = vcmp.lt.s32.totalorder %v148_v12, 96 }
  0x10   : > { %176 = vmatpush.bf16.msra.mxu0 %v499_v1  ;;  %241 = vmatpush.bf16.msra.mxu1 %v499_v1  ;;  %vm595_vm3 = vmand %vm149_vm0, %vm150_vm1 }
  0x11   : > { %307 = vmatpush.bf16.msra.mxu2 %v499_v1  ;;  %373 = vmatpush.bf16.msra.mxu3 %v499_v1 }
  0x13   : > { %177 = vmatmul.bf16.vlgmr.msra.gmra.mxu0 %v553_v2 }
  0x90   : > { %v178_v4 = vpop.f32.mrf.mxu0 }
  0x91   : > { %v182_v5 = vadd.f32 %v178_v4, %v152_v3 }
  0x93   : > { %v489_v6 = vmul.f32 -1.442695, %v182_v5 }
  0x95   : > { %513 = vpow2.f32 %v489_v6 }
  0x98   : > { %v180_v7 = vpop.f32.mrf.mxu0 }
  0x9b   : > { %v514_v8 = vpop.eup %513 }
  0x9c   : > { %v187_v9 = vadd.f32 1.0, %v514_v8 }
  0x9e   : > { %515 = vrcp.f32 %v187_v9  ;;  %v199_v15 = vand.u32 2147483648, %v187_v9  ;;  %v197_v17 = vand.u32 2147483647, %v187_v9  ;;  %vm193_vm4 = vweird.f32 %v187_v9 }
  0x9f   : > { %517 = vtanh.f32 %v182_v5 }
  0xa0   : > { %v200_v20 = vor.u32 1.1754944e-38, %v199_v15  ;;  %vm198_vm6 = vcmp.eq.f32.partialorder %v197_v17, 8.507059e+37 }
  0xa4   : > { %v516_v11 = vpop.eup %515 }
  0xa5   : > { %v189_v13 = vmul.f32 %v516_v11, %v187_v9  ;;  %vm194_vm2 = vweird.f32 %v516_v11  ;;  %v518_v22 = vpop.eup %517 }
  0xa6   : > { %vm195_vm5 = vmor %vm193_vm4, %vm194_vm2 }
  0xa7   : > { %v190_v14 = vsub.f32 1.0, %v189_v13 }
  0xa9   : > { %v191_v16 = vmul.f32 %v516_v11, %v190_v14 }
  0xab   : > { %v192_v19 = vadd.f32 %v516_v11, %v191_v16 }
  0xad   : > { %v196_v21 = vsel %vm195_vm5, %v516_v11, %v192_v19  ;;  %vm290_vm5 = vcmask 523520  }
  0xae   : > { %v201_v23 = vsel %vm198_vm6, %v200_v20, %v196_v21  ;;  %vm356_vm6 = vcmask 785920  }
  0xaf   : > { %v203_v24 = vsel %vm595_vm3, %v518_v22, %v201_v23 }
  0xb0   : > { %206 = vrot.lane.b32.xlu0 %v203_v24, %s554_s19  ;;  %v204_v27 = vmul.f32 0.0, %v203_v24 }
 0x122   : > { %v207_v25 = vpop.permute.xlu0 %206 }
 0x123   : > { %v209_v26 = vmul.f32 %v207_v25, %v203_v24 }
 0x125   : > { %211 = vrot.lane.b32.xlu0 %v209_v26, %s555_s20 }
 0x197   : > { %v212_v28 = vpop.permute.xlu0 %211 }
 0x198   : > { %v214_v29 = vadd.f32 %v212_v28, %v204_v27 }
 0x19a   : > { %519 = vtanh.f32 %v214_v29 }
 0x1a0   : > { %v520_v30 = vpop.eup %519 }
 0x1a1   : > { %217 = vrot.lane.b32.xlu1 %v520_v30, %s554_s19 }
 0x213   : > { %v218_v31 = vpop.permute.xlu1 %217 }
 0x214   : > { %v604_v32 = vmul.f32 %v218_v31, %v203_v24  ;;  %v358_v31 = vld [vmem:[%s592_s18 + $0x18] sm:$0xff] }
 0x216   : > { %v227_v33 = vpack.c.bf16 %v604_v32, %v604_v32 }
 0x218   : > { %229 = vrot.lane.b32.xlu1 %v227_v33, %s555_s20 }
 0x28a   : > { %v230_v34 = vpop.permute.xlu1 %229 }
 0x28b   : > { %490 = vmatmul.msk.bf16.vlgmr.msra.gmra.mxu1 %vm165_vm7, %v230_v34 }
 0x308   : > { %v243_v36 = vpop.f32.mrf.mxu1 }
 0x309   : > { %v247_v37 = vadd.f32 %v243_v36, %v226_v35 }
 0x30b   : > { %v491_v38 = vmul.f32 -1.442695, %v247_v37 }
 0x30d   : > { %521 = vpow2.f32 %v491_v38 }
 0x310   : > { %v245_v39 = vpop.f32.mrf.mxu1 }
 0x313   : > { %v522_v40 = vpop.eup %521 }
 0x314   : > { %v252_v41 = vadd.f32 1.0, %v522_v40 }
 0x316   : > { %523 = vrcp.f32 %v252_v41  ;;  %v264_v45 = vand.u32 2147483648, %v252_v41  ;;  %v262_v47 = vand.u32 2147483647, %v252_v41  ;;  %vm258_vm9 = vweird.f32 %v252_v41 }
 0x317   : > { %525 = vtanh.f32 %v247_v37 }
 0x318   : > { %v265_v49 = vor.u32 1.1754944e-38, %v264_v45  ;;  %vm263_vm11 = vcmp.eq.f32.partialorder %v262_v47, 8.507059e+37 }
 0x31c   : > { %v524_v42 = vpop.eup %523 }
 0x31d   : > { %v254_v43 = vmul.f32 %v524_v42, %v252_v41  ;;  %vm259_vm8 = vweird.f32 %v524_v42  ;;  %v526_v51 = vpop.eup %525 }
 0x31e   : > { %vm260_vm10 = vmor %vm258_vm9, %vm259_vm8 }
 0x31f   : > { %v255_v44 = vsub.f32 1.0, %v254_v43 }
 0x321   : > { %v256_v46 = vmul.f32 %v524_v42, %v255_v44 }
 0x323   : > { %v257_v48 = vadd.f32 %v524_v42, %v256_v46 }
 0x325   : > { %v261_v50 = vsel %vm260_vm10, %v524_v42, %v257_v48 }
 0x326   : > { %v266_v52 = vsel %vm263_vm11, %v265_v49, %v261_v50 }
 0x327   : > { %v268_v53 = vsel %vm595_vm3, %v526_v51, %v266_v52 }
 0x328   : > { %271 = vrot.lane.b32.xlu2 %v268_v53, %s554_s19  ;;  %v269_v56 = vmul.f32 %v268_v53, %v214_v29 }
 0x382   : > { %v272_v54 = vpop.permute.xlu2 %271 }
 0x383   : > { %v274_v55 = vmul.f32 %v272_v54, %v268_v53 }
 0x385   : > { %276 = vrot.lane.b32.xlu2 %v274_v55, %s555_s20 }
 0x3df   : > { %v277_v57 = vpop.permute.xlu2 %276 }
 0x3e0   : > { %v279_v58 = vadd.f32 %v277_v57, %v269_v56 }
 0x3e2   : > { %527 = vtanh.f32 %v279_v58 }
 0x3e8   : > { %v528_v59 = vpop.eup %527 }
 0x3e9   : > { %282 = vrot.lane.b32.xlu0 %v528_v59, %s554_s19 }
 0x45b   : > { %v283_v60 = vpop.permute.xlu0 %282 }
 0x45c   : > { %v616_v61 = vmul.f32 %v283_v60, %v268_v53 }
 0x45e   : > { %v293_v62 = vpack.c.bf16 %v616_v61, %v616_v61 }
 0x460   : > { %295 = vrot.lane.b32.xlu1 %v293_v62, %s555_s20 }
 0x4d2   : > { %v296_v63 = vpop.permute.xlu1 %295 }
 0x4d3   : > { %492 = vmatmul.msk.bf16.vlgmr.msra.gmra.mxu2 %vm165_vm7, %v296_v63 }
 0x556   : > { %v309_v1 = vpop.f32.mrf.mxu2 }
 0x557   : > { %v313_v2 = vadd.f32 %v309_v1, %v292_v0 }
 0x559   : > { %v493_v3 = vmul.f32 -1.442695, %v313_v2 }
 0x55b   : > { %529 = vpow2.f32 %v493_v3 }
 0x55e   : > { %v311_v4 = vpop.f32.mrf.mxu2 }
 0x561   : > { %v530_v5 = vpop.eup %529 }
 0x562   : > { %v318_v6 = vadd.f32 1.0, %v530_v5 }
 0x564   : > { %531 = vrcp.f32 %v318_v6  ;;  %v330_v10 = vand.u32 2147483648, %v318_v6  ;;  %v328_v12 = vand.u32 2147483647, %v318_v6  ;;  %vm324_vm13 = vweird.f32 %v318_v6 }
 0x565   : > { %533 = vtanh.f32 %v313_v2 }
 0x566   : > { %v331_v14 = vor.u32 1.1754944e-38, %v330_v10  ;;  %vm329_vm15 = vcmp.eq.f32.partialorder %v328_v12, 8.507059e+37 }
 0x56a   : > { %v532_v7 = vpop.eup %531 }
 0x56b   : > { %v320_v8 = vmul.f32 %v532_v7, %v318_v6  ;;  %vm325_vm12 = vweird.f32 %v532_v7  ;;  %v534_v16 = vpop.eup %533 }
 0x56c   : > { %vm326_vm14 = vmor %vm324_vm13, %vm325_vm12 }
 0x56d   : > { %v321_v9 = vsub.f32 1.0, %v320_v8 }
 0x56f   : > { %v322_v11 = vmul.f32 %v532_v7, %v321_v9 }
 0x571   : > { %v323_v13 = vadd.f32 %v532_v7, %v322_v11 }
 0x573   : > { %v327_v15 = vsel %vm326_vm14, %v532_v7, %v323_v13 }
 0x574   : > { %v332_v17 = vsel %vm329_vm15, %v331_v14, %v327_v15 }
 0x575   : > { %v334_v19 = vsel %vm595_vm3, %v534_v16, %v332_v17 }
 0x576   : > { %337 = vrot.lane.b32.xlu2 %v334_v19, %s554_s19  ;;  %v335_v22 = vmul.f32 %v334_v19, %v279_v58 }
 0x5d0   : > { %v338_v20 = vpop.permute.xlu2 %337 }
 0x5d1   : > { %v340_v21 = vmul.f32 %v338_v20, %v334_v19 }
 0x5d3   : > { %342 = vrot.lane.b32.xlu0 %v340_v21, %s555_s20 }
 0x645   : > { %v343_v23 = vpop.permute.xlu0 %342 }
 0x646   : > { %v345_v24 = vadd.f32 %v343_v23, %v335_v22 }
 0x648   : > { %535 = vtanh.f32 %v345_v24 }
 0x64e   : > { %v536_v25 = vpop.eup %535 }
 0x64f   : > { %348 = vrot.lane.b32.xlu1 %v536_v25, %s554_s19 }
 0x6c1   : > { %v349_v26 = vpop.permute.xlu1 %348 }
 0x6c2   : > { %v351_v27 = vmul.f32 %v349_v26, %v334_v19 }
 0x6c4   : > { %v359_v28 = vpack.c.bf16 %v351_v27, %v351_v27 }
 0x6c6   : > { %361 = vrot.lane.b32.xlu2 %v359_v28, %s555_s20 }
 0x6ce   : > { %222 = vrot.lane.b32.xlu2 %v604_v32, %s555_s20 }
 0x6d6   : > { %353 = vrot.lane.b32.xlu2 %v351_v27, %s556_s21 }
 0x720   : > { %v362_v29 = vpop.permute.xlu2 %361 }
 0x721   : > { %494 = vmatmul.msk.bf16.vlgmr.msra.gmra.mxu3 %vm165_vm7, %v362_v29 }
 0x728   : > { %v223_v30 = vpop.permute.xlu2 %222 }
 0x729   : > { %225 = vst.msk [vmem:[%s636_s25] sm:$0xff] %vm165_vm7, %v223_v30 }
 0x730   : > { %v354_v53 = vpop.permute.xlu2 %353 }
 0x7a4   : > { %v375_v33 = vpop.f32.mrf.mxu3 }
 0x7a5   : > { %v379_v34 = vadd.f32 %v375_v33, %v358_v31 }
 0x7a7   : > { %v495_v35 = vmul.f32 -1.442695, %v379_v34 }
 0x7a9   : > { %537 = vpow2.f32 %v495_v35 }
 0x7ac   : > { %v377_v32 = vpop.f32.mrf.mxu3 }
 0x7af   : > { %v538_v36 = vpop.eup %537 }
 0x7b0   : > { %v384_v37 = vadd.f32 1.0, %v538_v36 }
 0x7b2   : > { %539 = vrcp.f32 %v384_v37  ;;  %v396_v41 = vand.u32 2147483648, %v384_v37  ;;  %v394_v43 = vand.u32 2147483647, %v384_v37  ;;  %vm390_vm1 = vweird.f32 %v384_v37 }
 0x7b3   : > { %541 = vtanh.f32 %v379_v34 }
 0x7b4   : > { %v397_v45 = vor.u32 1.1754944e-38, %v396_v41  ;;  %vm395_vm4 = vcmp.eq.f32.partialorder %v394_v43, 8.507059e+37 }
 0x7b8   : > { %v540_v38 = vpop.eup %539 }
 0x7b9   : > { %v386_v39 = vmul.f32 %v540_v38, %v384_v37  ;;  %vm391_vm0 = vweird.f32 %v540_v38  ;;  %v542_v47 = vpop.eup %541 }
 0x7ba   : > { %vm392_vm2 = vmor %vm390_vm1, %vm391_vm0 }
 0x7bb   : > { %v387_v40 = vsub.f32 1.0, %v386_v39 }
 0x7bd   : > { %v388_v42 = vmul.f32 %v540_v38, %v387_v40 }
 0x7bf   : > { %v389_v44 = vadd.f32 %v540_v38, %v388_v42 }
 0x7c1   : > { %v393_v46 = vsel %vm392_vm2, %v540_v38, %v389_v44 }
 0x7c2   : > { %v398_v48 = vsel %vm395_vm4, %v397_v45, %v393_v46 }
 0x7c3   : > { %v400_v49 = vsel %vm595_vm3, %v542_v47, %v398_v48  ;;  %vm418_vm3 = vcmask 1048320  }
 0x7c4   : > { %403 = vrot.lane.b32.xlu0 %v400_v49, %s554_s19  ;;  %v401_v54 = vmul.f32 %v400_v49, %v345_v24 }
 0x7cc   : > { %287 = vrot.lane.b32.xlu0 %v616_v61, %s554_s19 }
 0x836   : > { %v404_v50 = vpop.permute.xlu0 %403 }
 0x837   : > { %v406_v51 = vmul.f32 %v404_v50, %v400_v49 }
 0x839   : > { %408 = vrot.lane.b32.xlu1 %v406_v51, %s555_s20 }
 0x83e   : > { %v288_v52 = vpop.permute.xlu0 %287 }
 0x83f   : > { %291 = vst.msk [vmem:[%s636_s25] sm:$0xff] %vm290_vm5, %v288_v52 }
 0x840   : > { %357 = vst.msk [vmem:[%s636_s25] sm:$0xff] %vm356_vm6, %v354_v53 }
 0x8ab   : > { %v409_v55 = vpop.permute.xlu1 %408 }
 0x8ac   : > { %v411_v18 = vadd.f32 %v409_v55, %v401_v54 }
 0x8ae   : > { %543 = vtanh.f32 %v411_v18 }
 0x8b4   : > { %v544_v56 = vpop.eup %543 }
 0x8b5   : > { %414 = vrot.lane.b32.xlu1 %v544_v56, %s554_s19 }
 0x927   : > { %v415_v57 = vpop.permute.xlu1 %414 }
 0x928   : > { %v417_v58 = vmul.f32 %v415_v57, %v400_v49 }
 0x92a   : > { %419 = vst.msk [vmem:[%s636_s25] sm:$0xff] %vm418_vm3, %v417_v58 }
 0x92b PF: > { %s12_s9 = sadd.s32 1, %s551_s9  }
 0x92c   : > { %p9_p4 = scmp.ge.s32.totalorder %s12_s9, 4  }
 0x92e   :  { %11 = sbr.rel (!%p9_p4) target bundleno = 1 (0x1), region = 58 }

// kernel: unpitched_channels_encoder_forward.4
= control target key start
LH: loop header
LB: loop body
LE: loop exit
PB: predicated region body
PF: predicated region fallthrough
CT: control target
= control target key end

     0   :  { %vm647_vm0 = vcmask 1045504   ;;  %vm637_vm1 = vcmask 359424   ;;  %vm884_vm4 = vcmask 261120   ;;  %s1818_s1 = inlined_call_operand.vmem [shape: bf16[940,32], index: 1, kind: input, shape index: {}]   ;;  %s1819_s2 = inlined_call_operand.vmem [shape: f32[1,32], index: 2, kind: input, shape index: {}]   ;;  %s1820_s0 = inlined_call_operand.vmem [shape: bf16[48,940], index: 0, kind: input, shape index: {}]   ;;  %s1821_s4 = inlined_call_operand.vmem [shape: f32[1,128], index: 4, kind: input, shape index: {}]   ;;  %s1822_s3 = inlined_call_operand.vmem [shape: bf16[32,128], index: 3, kind: input, shape index: {}]   ;;  %s1823_s5 = inlined_call_operand.vmem [shape: f32[48,128], index: 5, kind: output, shape index: {}]  }
   0x1   :  { %v1305_v0 = vld [vmem:[%s1818_s1 + $0x38] sm:$0xff]  ;;  %v1304_v3 = vld [vmem:[%s1818_s1 + $0x30] sm:$0xff]  ;;  %v1303_v6 = vld [vmem:[%s1818_s1 + $0x28] sm:$0xff] }
   0x2   :  { %v1321_v1 = vld [vmem:[%s1818_s1 + $0xb8] sm:$0xff]  ;;  %1359 = vmatpush.bf16.msra.mxu1 %v1305_v0  ;;  %v1320_v4 = vld [vmem:[%s1818_s1 + $0xb0] sm:$0xff]  ;;  %651 = vmatpush.bf16.msra.mxu0 %v1305_v0  ;;  %v1319_v7 = vld [vmem:[%s1818_s1 + $0xa8] sm:$0xff] }
   0x3   :  { %v1329_v2 = vld [vmem:[%s1818_s1 + $0xf8] sm:$0xff]  ;;  %699 = vmatpush.bf16.msra.mxu2 %v1321_v1  ;;  %v1328_v5 = vld [vmem:[%s1818_s1 + $0xf0] sm:$0xff]  ;;  %v1327_v8 = vld [vmem:[%s1818_s1 + $0xe8] sm:$0xff] }
   0x4   :  { %723 = vmatpush.bf16.msra.mxu3 %v1329_v2  ;;  %v1302_v9 = vld [vmem:[%s1818_s1 + $0x20] sm:$0xff]  ;;  %v1301_v12 = vld [vmem:[%s1818_s1 + $0x18] sm:$0xff]  ;;  %v1300_v15 = vld [vmem:[%s1818_s1 + $0x10] sm:$0xff] }
   0x5   :  { %v1318_v10 = vld [vmem:[%s1818_s1 + $0xa0] sm:$0xff]  ;;  %v1317_v13 = vld [vmem:[%s1818_s1 + $0x98] sm:$0xff]  ;;  %v1316_v16 = vld [vmem:[%s1818_s1 + $0x90] sm:$0xff] }
   0x6   :  { %1360 = vmatpush.bf16.msra.mxu1 %v1304_v3  ;;  %652 = vmatpush.bf16.msra.mxu0 %v1304_v3  ;;  %v1326_v11 = vld [vmem:[%s1818_s1 + $0xe0] sm:$0xff]  ;;  %v1325_v14 = vld [vmem:[%s1818_s1 + $0xd8] sm:$0xff]  ;;  %v1324_v17 = vld [vmem:[%s1818_s1 + $0xd0] sm:$0xff] }
   0x7   :  { %700 = vmatpush.bf16.msra.mxu2 %v1320_v4  ;;  %v1299_v18 = vld [vmem:[%s1818_s1 + $0x8] sm:$0xff]  ;;  %v1298_v21 = vld [vmem:[%s1818_s1] sm:$0xff]  ;;  %v1313_v24 = vld [vmem:[%s1818_s1 + $0x78] sm:$0xff] }
   0x8   :  { %724 = vmatpush.bf16.msra.mxu3 %v1328_v5  ;;  %v1315_v19 = vld [vmem:[%s1818_s1 + $0x88] sm:$0xff]  ;;  %v1314_v22 = vld [vmem:[%s1818_s1 + $0x80] sm:$0xff]  ;;  %v1505_v31 = vld [vmem:[%s1818_s1 + $0x178] sm:$0xff] }
   0x9   :  { %v1323_v20 = vld [vmem:[%s1818_s1 + $0xc8] sm:$0xff]  ;;  %v1322_v23 = vld [vmem:[%s1818_s1 + $0xc0] sm:$0xff]  ;;  %v1337_v35 = vld [vmem:[%s1818_s1 + $0x138] sm:$0xff] }
   0xa   :  { %1361 = vmatpush.bf16.msra.mxu1 %v1303_v6  ;;  %653 = vmatpush.bf16.msra.mxu0 %v1303_v6  ;;  %v938_v25 = vld [vmem:[%s1820_s0 + $0x8] sm:$0xf]  ;;  %v1275_v27 = vld [vmem:[%s1820_s0 + $0xc] sm:$0xf]  ;;  %v994_v29 = vld [vmem:[%s1820_s0 + $0x80] sm:$0xf] }
   0xb   :  { %701 = vmatpush.bf16.msra.mxu2 %v1319_v7  ;;  %v1279_v26 = vld [vmem:[%s1820_s0 + $0x24] sm:$0xf0]  ;;  %v940_v28 = vld [vmem:[%s1820_s0 + $0x28] sm:$0xf0]  ;;  %v1294_v30 = vld [vmem:[%s1820_s0 + $0x9c] sm:$0xf0] }
   0xc   :  { %725 = vmatpush.bf16.msra.mxu3 %v1327_v8  ;;  %v930_v32 = vld [vmem:[%s1820_s0] sm:$0xf]  ;;  %v939_v34 = vor.u32 %v1279_v26, %v938_v25  ;;  %v943_v36 = vor.u32 %v1275_v27, %v940_v28  ;;  %v995_v37 = vor.u32 %v1294_v30, %v994_v29  ;;  %v1312_v38 = vld [vmem:[%s1818_s1 + $0x70] sm:$0xff]  ;;  %v1353_v41 = vld [vmem:[%s1818_s1 + $0x1b8] sm:$0xff] }
   0xd   :  { %v1278_v33 = vld [vmem:[%s1820_s0 + $0x1c] sm:$0xf0]  ;;  %v1523_v40 = vld [vmem:[%s1818_s1 + $0x170] sm:$0xff]  ;;  %v1311_v43 = vld [vmem:[%s1818_s1 + $0x68] sm:$0xff] }
   0xe   :  { %1362 = vmatpush.bf16.msra.mxu1 %v1302_v9  ;;  %654 = vmatpush.bf16.msra.mxu0 %v1302_v9  ;;  %v931_v39 = vor.u32 %v1278_v33, %v930_v32  ;;  %v1336_v42 = vld [vmem:[%s1818_s1 + $0x130] sm:$0xff]  ;;  %v1538_v44 = vld [vmem:[%s1818_s1 + $0x168] sm:$0xff]  ;;  %v1310_v47 = vld [vmem:[%s1818_s1 + $0x60] sm:$0xff] }
   0xf   :  { %702 = vmatpush.bf16.msra.mxu2 %v1318_v10  ;;  %v1352_v45 = vld [vmem:[%s1818_s1 + $0x1b0] sm:$0xff]  ;;  %v1335_v46 = vld [vmem:[%s1818_s1 + $0x128] sm:$0xff]  ;;  %v1553_v48 = vld [vmem:[%s1818_s1 + $0x160] sm:$0xff] }
  0x10   :  { %726 = vmatpush.bf16.msra.mxu3 %v1326_v11  ;;  %v1351_v49 = vld [vmem:[%s1818_s1 + $0x1a8] sm:$0xff]  ;;  %v1334_v50 = vld [vmem:[%s1818_s1 + $0x120] sm:$0xff]  ;;  %v1309_v51 = vld [vmem:[%s1818_s1 + $0x58] sm:$0xff] }
  0x11   :  { %v970_v52 = vld [vmem:[%s1820_s0 + $0x48] sm:$0xf]  ;;  %v1283_v54 = vld [vmem:[%s1820_s0 + $0x4c] sm:$0xf]  ;;  %v962_v56 = vld [vmem:[%s1820_s0 + $0x40] sm:$0xf] }
  0x12   :  { %1363 = vmatpush.bf16.msra.mxu1 %v1301_v12  ;;  %655 = vmatpush.bf16.msra.mxu0 %v1301_v12  ;;  %v1287_v53 = vld [vmem:[%s1820_s0 + $0x64] sm:$0xf0]  ;;  %v972_v55 = vld [vmem:[%s1820_s0 + $0x68] sm:$0xf0]  ;;  %v1286_v57 = vld [vmem:[%s1820_s0 + $0x5c] sm:$0xf0] }
  0x13   :  { %703 = vmatpush.bf16.msra.mxu2 %v1317_v13  ;;  %v1586_v58 = vld [vmem:[%s1818_s1 + $0x158] sm:$0xff]  ;;  %v1350_v59 = vld [vmem:[%s1818_s1 + $0x1a0] sm:$0xff]  ;;  %v971_v60 = vor.u32 %v1287_v53, %v970_v52  ;;  %v975_v62 = vor.u32 %v1283_v54, %v972_v55  ;;  %v1308_v63 = vld [vmem:[%s1818_s1 + $0x50] sm:$0xff]  ;;  %v963_v0 = vor.u32 %v1286_v57, %v962_v56 }
  0x14   :  { %727 = vmatpush.bf16.msra.mxu3 %v1325_v14  ;;  %v1333_v61 = vld [vmem:[%s1818_s1 + $0x118] sm:$0xff]  ;;  %v1601_v1 = vld [vmem:[%s1818_s1 + $0x150] sm:$0xff]  ;;  %v1307_v4 = vld [vmem:[%s1818_s1 + $0x48] sm:$0xff] }
  0x15   :  { %v1349_v2 = vld [vmem:[%s1818_s1 + $0x198] sm:$0xff]  ;;  %v1332_v3 = vld [vmem:[%s1818_s1 + $0x110] sm:$0xff]  ;;  %v1615_v5 = vld [vmem:[%s1818_s1 + $0x148] sm:$0xff] }
  0x16   :  { %1364 = vmatpush.bf16.msra.mxu1 %v1300_v15  ;;  %656 = vmatpush.bf16.msra.mxu0 %v1300_v15  ;;  %v1348_v6 = vld [vmem:[%s1818_s1 + $0x190] sm:$0xff]  ;;  %v1331_v9 = vld [vmem:[%s1818_s1 + $0x108] sm:$0xff]  ;;  %v1306_v10 = vld [vmem:[%s1818_s1 + $0x40] sm:$0xff] }
  0x17   :  { %704 = vmatpush.bf16.msra.mxu2 %v1316_v16  ;;  %v1258_v7 = vld [vmem:[%s1818_s1 + $0x1d0] sm:$0xf]  ;;  %v1356_v8 = vld [vmem:[%s1818_s1 + $0x1d0] sm:$0x30]  ;;  %v1274_v11 = vld [vmem:[%s1820_s0 + $0x4] sm:$0xf] }
  0x18   :  { %728 = vmatpush.bf16.msra.mxu3 %v1324_v17  ;;  %v932_v12 = vld [vmem:[%s1820_s0 + $0x20] sm:$0xf0]  ;;  %v1259_v13 = vor.u32 %v1356_v8, %v1258_v7  ;;  %v1347_v14 = vld [vmem:[%s1818_s1 + $0x188] sm:$0xff]  ;;  %v1276_v55 = vld [vmem:[%s1820_s0 + $0x14] sm:$0xf] }
  0x19   :  { %v1330_v15 = vld [vmem:[%s1818_s1 + $0x100] sm:$0xff]  ;;  %v935_v17 = vor.u32 %v1274_v11, %v932_v12  ;;  %v1355_v29 = vld [vmem:[%s1818_s1 + $0x1c8] sm:$0xff]  ;;  %v948_v56 = vld [vmem:[%s1820_s0 + $0x30] sm:$0xf0] }
  0x1a   :  { %1365 = vmatpush.bf16.msra.mxu1 %v1299_v18  ;;  %657 = vmatpush.bf16.msra.mxu0 %v1299_v18  ;;  %v1338_v16 = vld [vmem:[%s1818_s1 + $0x140] sm:$0xff]  ;;  %v1002_v18 = vld [vmem:[%s1820_s0 + $0x88] sm:$0xf]  ;;  %v951_v57 = vor.u32 %v1276_v55, %v948_v56 }
  0x1b   :  { %705 = vmatpush.bf16.msra.mxu2 %v1315_v19  ;;  %v1295_v19 = vld [vmem:[%s1820_s0 + $0xa4] sm:$0xf0]  ;;  %v1346_v25 = vld [vmem:[%s1818_s1 + $0x180] sm:$0xff] }
  0x1c   :  { %729 = vmatpush.bf16.msra.mxu3 %v1323_v20  ;;  %v1291_v20 = vld [vmem:[%s1820_s0 + $0x8c] sm:$0xf]  ;;  %v1003_v26 = vor.u32 %v1295_v19, %v1002_v18  ;;  %v1354_v30 = vld [vmem:[%s1818_s1 + $0x1c0] sm:$0xff] }
  0x1d   :  { %v964_v32 = vld [vmem:[%s1820_s0 + $0x60] sm:$0xf0] }
  0x1e   :  { %1366 = vmatpush.bf16.msra.mxu1 %v1298_v21  ;;  %658 = vmatpush.bf16.msra.mxu0 %v1298_v21  ;;  %v1004_v21 = vld [vmem:[%s1820_s0 + $0xa8] sm:$0xf0] }
  0x1f   :  { %706 = vmatpush.bf16.msra.mxu2 %v1314_v22  ;;  %v649_v22 = vsel %vm647_vm0, %v1259_v13, 0  ;;  %v1007_v27 = vor.u32 %v1291_v20, %v1004_v21 }
  0x20   :  { %730 = vmatpush.bf16.msra.mxu3 %v1322_v23  ;;  %v946_v23 = vld [vmem:[%s1820_s0 + $0x10] sm:$0xf] }
  0x21   :  { %669 = vmatmul.bf16.vlgmr.msra.gmra.mxu1 %v995_v37  ;;  %659 = vmatmul.bf16.vlgmr.msra.gmra.mxu0 %v931_v39  ;;  %v1012_v37 = vld [vmem:[%s1820_s0 + $0xb0] sm:$0xf0]  ;;  %v1288_v39 = vld [vmem:[%s1820_s0 + $0x6c] sm:$0xf0] }
  0x22   :  { %675 = vmatpush.bf16.msrb.mxu1 %v1313_v24  ;;  %707 = vmatmul.bf16.vlgmr.msra.gmra.mxu2 %v939_v34  ;;  %v1280_v24 = vld [vmem:[%s1820_s0 + $0x2c] sm:$0xf0]  ;;  %v954_v34 = vld [vmem:[%s1820_s0 + $0x18] sm:$0xf] }
  0x23   :  { %747 = vmatpush.bf16.msrb.mxu0 %v1337_v35  ;;  %731 = vmatmul.bf16.vlgmr.msra.gmra.mxu3 %v943_v36  ;;  %v947_v28 = vor.u32 %v1280_v24, %v946_v23  ;;  %v1281_v35 = vld [vmem:[%s1820_s0 + $0x34] sm:$0xf0]  ;;  %v1292_v36 = vld [vmem:[%s1820_s0 + $0x94] sm:$0xf] }
  0x24   :  { %1367 = vmatpush.bf16.msrb.mxu3 %v1505_v31  ;;  %795 = vmatpush.bf16.msrb.mxu2 %v1353_v41  ;;  %v1015_v41 = vor.u32 %v1292_v36, %v1012_v37 }
  0x26   :  { %676 = vmatpush.bf16.msrb.mxu1 %v1312_v38  ;;  %v978_v38 = vld [vmem:[%s1820_s0 + $0x50] sm:$0xf] }
  0x27   :  { %748 = vmatpush.bf16.msrb.mxu0 %v1336_v42  ;;  %v979_v42 = vor.u32 %v1288_v39, %v978_v38 }
  0x28   :  { %1368 = vmatpush.bf16.msrb.mxu3 %v1523_v40  ;;  %796 = vmatpush.bf16.msrb.mxu2 %v1352_v45 }
  0x2a   :  { %677 = vmatpush.bf16.msrb.mxu1 %v1311_v43  ;;  %v1290_v43 = vld [vmem:[%s1820_s0 + $0x84] sm:$0xf] }
  0x2b   :  { %749 = vmatpush.bf16.msrb.mxu0 %v1335_v46  ;;  %v986_v46 = vld [vmem:[%s1820_s0 + $0x58] sm:$0xf] }
  0x2c   :  { %1369 = vmatpush.bf16.msrb.mxu3 %v1538_v44  ;;  %797 = vmatpush.bf16.msrb.mxu2 %v1351_v49  ;;  %v956_v49 = vld [vmem:[%s1820_s0 + $0x38] sm:$0xf0] }
  0x2e   :  { %678 = vmatpush.bf16.msrb.mxu1 %v1310_v47  ;;  %v1289_v47 = vld [vmem:[%s1820_s0 + $0x74] sm:$0xf0] }
  0x2f   :  { %750 = vmatpush.bf16.msrb.mxu0 %v1334_v50  ;;  %v1010_v50 = vld [vmem:[%s1820_s0 + $0x90] sm:$0xf]  ;;  %v987_v52 = vor.u32 %v1289_v47, %v986_v46 }
  0x30   :  { %1370 = vmatpush.bf16.msrb.mxu3 %v1553_v48  ;;  %798 = vmatpush.bf16.msrb.mxu2 %v1350_v59  ;;  %v1297_v59 = vld [vmem:[%s1820_s0 + $0xb4] sm:$0xf0] }
  0x31   :  { %664 = vmatmul.bf16.gmra.mxu0 %v963_v0  ;;  %v1284_v0 = vld [vmem:[%s1820_s0 + $0x54] sm:$0xf] }
  0x32   :  { %679 = vmatpush.bf16.msrb.mxu1 %v1309_v51  ;;  %712 = vmatmul.bf16.gmra.mxu2 %v971_v60  ;;  %v1296_v51 = vld [vmem:[%s1820_s0 + $0xac] sm:$0xf0]  ;;  %v1285_v60 = vld [vmem:[%s1820_s0 + $0x5c] sm:$0xf] }
  0x33   :  { %751 = vmatpush.bf16.msrb.mxu0 %v1333_v61  ;;  %736 = vmatmul.bf16.gmra.mxu3 %v975_v62  ;;  %v1011_v54 = vor.u32 %v1296_v51, %v1010_v50  ;;  %v988_v61 = vld [vmem:[%s1820_s0 + $0x78] sm:$0xf0] }
  0x34   :  { %1371 = vmatpush.bf16.msrb.mxu3 %v1586_v58  ;;  %799 = vmatpush.bf16.msrb.mxu2 %v1349_v2 }
  0x36   :  { %680 = vmatpush.bf16.msrb.mxu1 %v1308_v63  ;;  %v991_v63 = vor.u32 %v1285_v60, %v988_v61 }
  0x37   :  { %752 = vmatpush.bf16.msrb.mxu0 %v1332_v3  ;;  %v1293_v3 = vld [vmem:[%s1820_s0 + $0x9c] sm:$0xf] }
  0x38   :  { %1372 = vmatpush.bf16.msrb.mxu3 %v1601_v1  ;;  %800 = vmatpush.bf16.msrb.mxu2 %v1348_v6 }
  0x3a   :  { %681 = vmatpush.bf16.msrb.mxu1 %v1307_v4  ;;  %v1020_v4 = vld [vmem:[%s1820_s0 + $0xb8] sm:$0xf0] }
  0x3b   :  { %753 = vmatpush.bf16.msrb.mxu0 %v1331_v9 }
  0x3c   :  { %1373 = vmatpush.bf16.msrb.mxu3 %v1615_v5  ;;  %801 = vmatpush.bf16.msrb.mxu2 %v1347_v14 }
  0x3e   :  { %682 = vmatpush.bf16.msrb.mxu1 %v1306_v10 }
  0x3f   :  { %754 = vmatpush.bf16.msrb.mxu0 %v1330_v15 }
  0x40   :  { %1374 = vmatpush.bf16.msrb.mxu3 %v1338_v16  ;;  %802 = vmatpush.bf16.msrb.mxu2 %v1346_v25 }
  0x41   :  { %683 = vmatmul.bf16.vlgmr.msrb.gmra.mxu1 %v935_v17 }
  0x42   :  { %771 = vmatpush.bf16.msra.mxu1 %v1505_v31  ;;  %717 = vmatmul.bf16.gmra.mxu2 %v1003_v26  ;;  %v1282_v31 = vld [vmem:[%s1820_s0 + $0x44] sm:$0xf] }
  0x43   :  { %741 = vmatmul.bf16.gmra.mxu3 %v1007_v27  ;;  %755 = vmatmul.bf16.vlgmr.msrb.gmra.mxu0 %v947_v28  ;;  %v967_v33 = vor.u32 %v1282_v31, %v964_v32  ;;  %v1377_v32 = vld [vmem:[%s1819_s2] ss:$0 sm:$0xff] }
  0x44   :  { %824 = vmatpush.bf16.msra.mxu3 %v649_v22 }
  0x46   :  { %772 = vmatpush.bf16.msra.mxu1 %v1523_v40  ;;  %v955_v40 = vor.u32 %v1281_v35, %v954_v34 }
  0x48   :  { %825 = vmatpush.bf16.msra.mxu3 %v1355_v29 }
  0x4a   :  { %773 = vmatpush.bf16.msra.mxu1 %v1538_v44  ;;  %v996_v44 = vld [vmem:[%s1820_s0 + $0xa0] sm:$0xf0] }
  0x4b   :  { %v999_v45 = vor.u32 %v1290_v43, %v996_v44 }
  0x4c   :  { %826 = vmatpush.bf16.msra.mxu3 %v1354_v30  ;;  %v1357_v30 = vld [vmem:[%s1822_s3] sm:$0xff] }
  0x4e   :  { %774 = vmatpush.bf16.msra.mxu1 %v1553_v48  ;;  %v1277_v48 = vld [vmem:[%s1820_s0 + $0x1c] sm:$0xf] }
  0x4f   :  { %v959_v53 = vor.u32 %v1277_v48, %v956_v49 }
  0x51   :  { %688 = vmatmul.bf16.gmra.mxu1 %v967_v33 }
  0x52   :  { %775 = vmatpush.bf16.msra.mxu1 %v1586_v58  ;;  %803 = vmatmul.bf16.vlgmr.msrb.gmra.mxu2 %v955_v40  ;;  %v1018_v58 = vld [vmem:[%s1820_s0 + $0x98] sm:$0xf] }
  0x53   :  { %789 = vmatmul.bf16.vlgmr.msrb.gmra.mxu3 %v1015_v41  ;;  %760 = vmatmul.bf16.gmra.mxu0 %v979_v42  ;;  %v1019_v62 = vor.u32 %v1297_v59, %v1018_v58 }
  0x56   :  { %776 = vmatpush.bf16.msra.mxu1 %v1601_v1  ;;  %v980_v1 = vld [vmem:[%s1820_s0 + $0x70] sm:$0xf0] }
  0x57   :  { %v983_v2 = vor.u32 %v1284_v0, %v980_v1 }
  0x5a   :  { %777 = vmatpush.bf16.msra.mxu1 %v1615_v5  ;;  %v1023_v5 = vor.u32 %v1293_v3, %v1020_v4 }
  0x5e   :  { %778 = vmatpush.bf16.msra.mxu1 %v1338_v16  ;;  %v1358_v16 = vld [vmem:[%s1822_s3 + $0x8] sm:$0xff] }
  0x5f   :  { %900 = vmatpush.bf16.msra.mxu0 %v1358_v16  ;;  %1375 = vmatpush.bf16.msra.mxu2 %v1358_v16 }
  0x61   :  { %693 = vmatmul.bf16.gmra.mxu1 %v999_v45 }
  0x62   :  { %808 = vmatmul.bf16.gmra.mxu2 %v987_v52 }
  0x63   :  { %1260 = vmatmul.msk.bf16.vlgmr.msra.gmra.mxu3 %vm637_vm1, %v959_v53  ;;  %765 = vmatmul.bf16.gmra.mxu0 %v1011_v54 }
  0x64   :  { %901 = vmatpush.bf16.msra.mxu0 %v1357_v30  ;;  %1376 = vmatpush.bf16.msra.mxu2 %v1357_v30 }
  0x71   :  { %779 = vmatmul.bf16.vlgmr.msra.gmra.mxu1 %v951_v57 }
  0x72   :  { %813 = vmatmul.bf16.gmra.mxu2 %v1019_v62 }
  0x73   :  { %1261 = vmatmul.msk.bf16.gmra.mxu3 %vm637_vm1, %v991_v63 }
  0x81   :  { %784 = vmatmul.bf16.gmra.mxu1 %v983_v2 }
  0x83   :  { %1262 = vmatmul.msk.bf16.gmra.mxu3 %vm637_vm1, %v1023_v5 }
  0x9e   :  { %v670_v8 = vpop.f32.mrf.mxu1  ;;  %v660_v9 = vpop.f32.mrf.mxu0 }
  0x9f   :  { %v661_v34 = vadd.f32 %v1377_v32, %v660_v9  ;;  %v671_v35 = vadd.f32 %v1377_v32, %v670_v8 }
  0xa5   :  { %v708_v6 = vpop.f32.mrf.mxu2 }
  0xa6   :  { %v732_v7 = vpop.f32.mrf.mxu3  ;;  %v1764_v12 = vpop.f32.mrf.mxu1 }
  0xa7   :  { %v662_v13 = vpop.f32.mrf.mxu0  ;;  %v673_v9 = vadd.f32 %v1377_v32, %v1764_v12 }
  0xa8   :  { %v663_v46 = vadd.f32 %v1377_v32, %v662_v13 }
  0xad   :  { %v710_v10 = vpop.f32.mrf.mxu2 }
  0xae   :  { %v734_v11 = vpop.f32.mrf.mxu3 }
  0xaf   :  { %v665_v19 = vpop.f32.mrf.mxu0 }
  0xb0   :  { %v666_v51 = vadd.f32 %v1377_v32, %v665_v19 }
  0xb5   :  { %v713_v14 = vpop.f32.mrf.mxu2 }
  0xb6   :  { %v737_v15 = vpop.f32.mrf.mxu3 }
  0xb7   :  { %v667_v24 = vpop.f32.mrf.mxu0 }
  0xb8   :  { %v668_v1 = vadd.f32 %v1377_v32, %v667_v24 }
  0xbd   :  { %v1769_v18 = vpop.f32.mrf.mxu2 }
  0xbe   :  { %v684_v17 = vpop.f32.mrf.mxu1  ;;  %v1771_v20 = vpop.f32.mrf.mxu3 }
  0xbf   :  { %v685_v40 = vadd.f32 %v684_v17, %v661_v34 }
  0xc0   :  { %v756_v28 = vpop.f32.mrf.mxu0 }
  0xc1   :  { %v709_v44 = vadd.f32 %v708_v6, %v685_v40 }
  0xc3   :  { %v733_v49 = vadd.f32 %v732_v7, %v709_v44 }
  0xc5   :  { %v718_v22 = vpop.f32.mrf.mxu2  ;;  %v757_v52 = vadd.f32 %v756_v28, %v733_v49 }
  0xc6   :  { %v686_v21 = vpop.f32.mrf.mxu1  ;;  %v742_v23 = vpop.f32.mrf.mxu3 }
  0xc7   :  { %v687_v50 = vadd.f32 %v686_v21, %v663_v46 }
  0xc8   :  { %v758_v36 = vpop.f32.mrf.mxu0 }
  0xc9   :  { %v711_v53 = vadd.f32 %v710_v10, %v687_v50 }
  0xcb   :  { %v735_v59 = vadd.f32 %v734_v11, %v711_v53 }
  0xcd   :  { %v1773_v26 = vpop.f32.mrf.mxu2  ;;  %v759_v63 = vadd.f32 %v758_v36, %v735_v59 }
  0xce   :  { %v689_v25 = vpop.f32.mrf.mxu1  ;;  %v1775_v27 = vpop.f32.mrf.mxu3 }
  0xcf   :  { %v690_v57 = vadd.f32 %v689_v25, %v666_v51 }
  0xd0   :  { %v761_v47 = vpop.f32.mrf.mxu0 }
  0xd1   :  { %v714_v62 = vadd.f32 %v713_v14, %v690_v57 }
  0xd3   :  { %v738_v4 = vadd.f32 %v737_v15, %v714_v62 }
  0xd5   :  { %v804_v33 = vpop.f32.mrf.mxu2  ;;  %v762_v16 = vadd.f32 %v761_v47, %v738_v4 }
  0xd6   :  { %v691_v29 = vpop.f32.mrf.mxu1  ;;  %v1780_v31 = vpop.f32.mrf.mxu3 }
  0xd7   :  { %v692_v7 = vadd.f32 %v691_v29, %v668_v1 }
  0xd8   :  { %v763_v60 = vpop.f32.mrf.mxu0 }
  0xd9   :  { %v716_v11 = vadd.f32 %v1769_v18, %v692_v7 }
  0xdb   :  { %v740_v28 = vadd.f32 %v1771_v20, %v716_v11 }
  0xdd   :  { %v806_v43 = vpop.f32.mrf.mxu2  ;;  %v764_v32 = vadd.f32 %v763_v60, %v740_v28 }
  0xde   :  { %v694_v37 = vpop.f32.mrf.mxu1  ;;  %v1785_v39 = vpop.f32.mrf.mxu3 }
  0xdf   :  { %v695_v38 = vadd.f32 %v694_v37, %v671_v35 }
  0xe0   :  { %v766_v17 = vpop.f32.mrf.mxu0 }
  0xe1   :  { %v719_v41 = vadd.f32 %v718_v22, %v695_v38 }
  0xe3   :  { %v743_v42 = vadd.f32 %v742_v23, %v719_v41 }
  0xe5   :  { %v809_v54 = vpop.f32.mrf.mxu2  ;;  %v767_v18 = vadd.f32 %v766_v17, %v743_v42 }
  0xe6   :  { %v696_v45 = vpop.f32.mrf.mxu1  ;;  %v828_v48 = vpop.f32.mrf.mxu3 }
  0xe7   :  { %v697_v14 = vadd.f32 %v696_v45, %v673_v9  ;;  %v791_v41 = vadd.f32 %v1780_v31, %v767_v18 }
  0xe8   :  { %v768_v34 = vpop.f32.mrf.mxu0 }
  0xe9   :  { %v721_v12 = vadd.f32 %v1773_v26, %v697_v14 }
  0xed   :  { %v811_v5 = vpop.f32.mrf.mxu2 }
  0xee   :  { %v780_v55 = vpop.f32.mrf.mxu1  ;;  %v830_v58 = vpop.f32.mrf.mxu3 }
  0xef   :  { %v781_v56 = vadd.f32 %v780_v55, %v757_v52 }
  0xf1   :  { %v805_v61 = vadd.f32 %v804_v33, %v781_v56  ;;  %v745_v33 = vadd.f32 %v1775_v27, %v721_v12 }
  0xf3   :  { %v829_v2 = vadd.f32 %v828_v48, %v805_v61  ;;  %v769_v40 = vadd.f32 %v768_v34, %v745_v33 }
  0xf5   :  { %v849_v10 = vmul.f32 0.01, %v829_v2  ;;  %vm843_vm2 = vcmp.gt.f32.partialorder %v829_v2, 0.0  ;;  %v814_v29 = vpop.f32.mrf.mxu2  ;;  %v793_v46 = vadd.f32 %v1785_v39, %v769_v40  ;;  %v1378_v39 = vld [vmem:[%s1821_s4] ss:$0 sm:$0xff] }
  0xf6   :  { %v782_v0 = vpop.f32.mrf.mxu1  ;;  %v833_v6 = vpop.f32.mrf.mxu3  ;;  %v815_v20 = vadd.f32 %v814_v29, %v791_v41 }
  0xf7   :  { %v783_v3 = vadd.f32 %v782_v0, %v759_v63  ;;  %v855_v22 = vsel %vm843_vm2, %v829_v2, %v849_v10 }
  0xf9   :  { %v807_v8 = vadd.f32 %v806_v43, %v783_v3 }
  0xfb   :  { %v831_v13 = vadd.f32 %v830_v58, %v807_v8 }
  0xfd   :  { %vm844_vm3 = vcmp.gt.f32.partialorder %v831_v13, 0.0  ;;  %v850_v19 = vmul.f32 0.01, %v831_v13  ;;  %v816_v45 = vpop.f32.mrf.mxu2 }
  0xfe   :  { %v785_v21 = vpop.f32.mrf.mxu1  ;;  %v835_v25 = vpop.f32.mrf.mxu3  ;;  %v817_v27 = vadd.f32 %v816_v45, %v793_v46 }
  0xff   :  { %v856_v23 = vsel %vm844_vm3, %v831_v13, %v850_v19  ;;  %v786_v15 = vadd.f32 %v785_v21, %v762_v16 }
 0x100   :  { %v861_v24 = vpack.c.bf16 %v856_v23, %v855_v22 }
 0x101   :  { %v810_v30 = vadd.f32 %v809_v54, %v786_v15 }
 0x102   :  { %1271 = vmatmul.msk.bf16.vlgmr.msra.gmra.mxu0 %vm884_vm4, %v861_v24 }
 0x103   :  { %v834_v36 = vadd.f32 %v833_v6, %v810_v30 }
 0x105   :  { %v851_v44 = vmul.f32 0.01, %v834_v36  ;;  %vm845_vm5 = vcmp.gt.f32.partialorder %v834_v36, 0.0 }
 0x106   :  { %v787_v35 = vpop.f32.mrf.mxu1  ;;  %v838_v38 = vpop.f32.mrf.mxu3 }
 0x107   :  { %v788_v37 = vadd.f32 %v787_v35, %v764_v32  ;;  %v839_v42 = vadd.f32 %v838_v38, %v815_v20  ;;  %v857_v48 = vsel %vm845_vm5, %v834_v36, %v851_v44 }
 0x109   :  { %v812_v43 = vadd.f32 %v811_v5, %v788_v37  ;;  %v853_v52 = vmul.f32 0.01, %v839_v42  ;;  %vm847_vm7 = vcmp.gt.f32.partialorder %v839_v42, 0.0 }
 0x10b   :  { %v836_v26 = vadd.f32 %v835_v25, %v812_v43  ;;  %v859_v54 = vsel %vm847_vm7, %v839_v42, %v853_v52 }
 0x10d   :  { %v852_v47 = vmul.f32 0.01, %v836_v26  ;;  %vm846_vm6 = vcmp.gt.f32.partialorder %v836_v26, 0.0 }
 0x10e   :  { %v840_v50 = vpop.f32.mrf.mxu3 }
 0x10f   :  { %v858_v49 = vsel %vm846_vm6, %v836_v26, %v852_v47  ;;  %v841_v53 = vadd.f32 %v840_v50, %v817_v27 }
 0x110   :  { %v862_v51 = vpack.c.bf16 %v858_v49, %v857_v48 }
 0x111   :  { %vm848_vm8 = vcmp.gt.f32.partialorder %v841_v53, 0.0  ;;  %v854_v31 = vmul.f32 0.01, %v841_v53 }
 0x112   :  { %1272 = vmatmul.msk.bf16.gmra.mxu0 %vm884_vm4, %v862_v51 }
 0x113   :  { %v860_v55 = vsel %vm848_vm8, %v841_v53, %v854_v31 }
 0x114   :  { %v863_v56 = vpack.c.bf16 %v860_v55, %v859_v54 }
 0x116   :  { %1273 = vmatmul.msk.bf16.vlgmr.msra.gmra.mxu2 %vm884_vm4, %v863_v56 }
 0x17f   :  { %v903_v57 = vpop.f32.mrf.mxu0 }
 0x180   :  { %v904_v58 = vadd.f32 %v1378_v39, %v903_v57 }
 0x182   :  { %918 = vst [vmem:[%s1823_s5] sm:$0xff] %v904_v58 }
 0x187   :  { %v905_v59 = vpop.f32.mrf.mxu0 }
 0x188   :  { %v906_v60 = vadd.f32 %v1378_v39, %v905_v59 }
 0x18a   :  { %919 = vst [vmem:[%s1823_s5 + $0x8] sm:$0xff] %v906_v60 }
 0x18f   :  { %v908_v61 = vpop.f32.mrf.mxu0 }
 0x190   :  { %v909_v62 = vadd.f32 %v1378_v39, %v908_v61 }
 0x192   :  { %920 = vst [vmem:[%s1823_s5 + $0x10] sm:$0xff] %v909_v62 }
 0x197   :  { %v910_v63 = vpop.f32.mrf.mxu0 }
 0x198   :  { %v911_v0 = vadd.f32 %v1378_v39, %v910_v63 }
 0x199   :  { %v913_v1 = vpop.f32.mrf.mxu2 }
 0x19a   :  { %921 = vst [vmem:[%s1823_s5 + $0x18] sm:$0xff] %v911_v0  ;;  %v914_v2 = vadd.f32 %v1378_v39, %v913_v1 }
 0x19c   :  { %922 = vst [vmem:[%s1823_s5 + $0x20] sm:$0xff] %v914_v2 }
 0x1a1   :  { %v915_v3 = vpop.f32.mrf.mxu2 }
 0x1a2   :  { %v916_v4 = vadd.f32 %v1378_v39, %v915_v3 }
 0x1a4   :  { %923 = vst [vmem:[%s1823_s5 + $0x28] sm:$0xff] %v916_v4 }

// kernel: unpitched_channels_encoder_forward.6
= control target key start
LH: loop header
LB: loop body
LE: loop exit
PB: predicated region body
PF: predicated region fallthrough
CT: control target
= control target key end

     0   :  { %vm16_vm0 = vcmask 1041408   ;;  %vm18_vm1 = vcmask 517120   ;;  %v113_v14 = vmov 269488144   ;;  %vm63_vm3 = vcmask 1024   ;;  %s134_s0 = inlined_call_operand.vmem [shape: f32[2,192], index: 0, kind: input, shape index: {}]   ;;  %s135_s1 = inlined_call_operand.vmem [shape: f32[1,192], index: 1, kind: output, shape index: {}]  }
   0x1   :  { %v8_v0 = vld [vmem:[%s134_s0] sm:$0xf]  ;;  %v38_v15 = vunpack.c.l.s4 %v113_v14  ;;  %v97_v57 = vlaneseq  ;;  %vm94_vm9 = vcmask 1040384  }
   0x2   :  { %v9_v1 = vmul.f32 %v8_v0, %v8_v0 }
   0x3   :  { %v39_v18 = vunpack.c.0.s8 %v38_v15  ;;  %vm99_vm10 = vcmp.lt.s32.totalorder %v97_v57, 192 }
   0x4   :  { %11 = vst [vmem:[#allocation1] ss:$4 sm:$0xff] %v9_v1 }
   0xb   :  { %v12_v2 = vld.sshfl [vmem:[#allocation1] sm:$0xff pattern:$0x73625140]  ;;  %v13_v3 = vld.sshfl [vmem:[#allocation1 + $0x8] sm:$0xff pattern:$0x73625140] }
   0xc   :  { %v17_v4 = vsel %vm16_vm0, %v12_v2, 0.0  ;;  %v19_v5 = vsel %vm18_vm1, %v13_v3, 0.0 }
   0xd   :  { %v20_v6 = vadd.f32 %v19_v5, %v17_v4 }
   0xf   :  { %21 = vadd.xlane.f32.xlu0 %v20_v6 }
  0x82   :  { %v22_v7 = vpop.xlane.xlu0 %21 }
  0x83   :  { %v23_v8 = vadd.f32 1.0, %v22_v7 }
  0x85   :  { %109 = vrsqrt.f32 %v23_v8  ;;  %vm31_vm2 = vcmp.eq.f32.partialorder %v23_v8, inf  ;;  %v34_v19 = vand.u32 2147483648, %v23_v8  ;;  %vm33_vm4 = vcmp.eq.f32.partialorder %v23_v8, 0.0 }
  0x8b   :  { %v110_v9 = vpop.eup %109 }
  0x8c   :  { %v25_v10 = vmul.f32 %v110_v9, %v23_v8 }
  0x8e   :  { %v26_v11 = vmul.f32 %v110_v9, %v25_v10 }
  0x90   :  { %v27_v12 = vmul.f32 0.5, %v26_v11 }
  0x92   :  { %v28_v13 = vsub.f32 1.5, %v27_v12 }
  0x94   :  { %v29_v16 = vmul.f32 %v110_v9, %v28_v13 }
  0x96   :  { %v30_v17 = vmul.f32 %v29_v16, %v23_v8 }
  0x98   :  { %v32_v20 = vsel %vm31_vm2, %v23_v8, %v30_v17 }
  0x99   :  { %v35_v21 = vsel %vm33_vm4, %v34_v19, %v32_v20 }
  0x9a   :  { %v64_v22 = vsel %vm63_vm3, %v35_v21, 0.0  ;;  %v40_v23 = vperm.slane %v35_v21, %v39_v18 }
  0x9b   :  { %65 = vadd.xlane.f32.xlu0 %v64_v22 }
  0x9c   :  { %v42_v24 = vmul.f32 %v40_v23, %v8_v0 }
  0x9e   :  { %44 = vst [vmem:[#allocation1] ss:$4 sm:$0xff] %v42_v24 }
  0xa5   :  { %v46_v32 = vld.sshfl [vmem:[#allocation1 + $0x8] sm:$0xff pattern:$0x73625140]  ;;  %v45_v33 = vld.sshfl [vmem:[#allocation1] sm:$0xff pattern:$0x73625140] }
  0xa6   :  { %v56_v34 = vsel %vm18_vm1, %v46_v32, 0.0  ;;  %v49_v35 = vsel %vm16_vm0, %v45_v33, 0.0 }
  0xa7   :  { %v57_v36 = vrot.slane %v56_v34, 4  ;;  %v50_v37 = vrot.slane %v49_v35, 4 }
  0xa9   :  { %v58_v38 = vadd.f32 %v57_v36, %v56_v34  ;;  %v51_v40 = vadd.f32 %v50_v37, %v49_v35 }
  0xab   :  { %v59_v41 = vrot.slane %v58_v38, 2  ;;  %v52_v42 = vrot.slane %v51_v40, 2 }
  0xad   :  { %v60_v44 = vadd.f32 %v59_v41, %v58_v38  ;;  %v53_v46 = vadd.f32 %v52_v42, %v51_v40 }
  0xaf   :  { %v61_v49 = vrot.slane %v60_v44, 1  ;;  %v54_v52 = vrot.slane %v53_v46, 1 }
  0xb1   :  { %v62_v55 = vadd.f32 %v61_v49, %v60_v44  ;;  %v55_v59 = vadd.f32 %v54_v52, %v53_v46 }
 0x10e   :  { %v66_v25 = vpop.xlane.xlu0 %65 }
 0x10f   :  { %v67_v26 = vrot.slane %v66_v25, 4 }
 0x111   :  { %v68_v27 = vadd.f32 %v67_v26, %v66_v25 }
 0x113   :  { %v69_v28 = vrot.slane %v68_v27, 2 }
 0x115   :  { %v70_v29 = vadd.f32 %v69_v28, %v68_v27 }
 0x117   :  { %v71_v30 = vrot.slane %v70_v29, 1 }
 0x119   :  { %v72_v31 = vadd.f32 %v71_v30, %v70_v29 }
 0x11b   :  { %106 = vpush %v72_v31 }
 0x14c   :  { %s107_s0 = spop %106 }
 0x14d   :  { %v74_v39 = vstv %s107_s0 }
 0x14e   :  { %111 = vrcp.f32 %v74_v39  ;;  %v86_v48 = vand.u32 2147483648, %v74_v39  ;;  %v84_v51 = vand.u32 2147483647, %v74_v39  ;;  %vm80_vm6 = vweird.f32 %v74_v39 }
 0x150   :  { %v87_v54 = vor.u32 1.1754944e-38, %v86_v48  ;;  %vm85_vm8 = vcmp.eq.f32.partialorder %v84_v51, 8.507059e+37 }
 0x154   :  { %v112_v43 = vpop.eup %111 }
 0x155   :  { %v76_v45 = vmul.f32 %v112_v43, %v74_v39  ;;  %vm81_vm5 = vweird.f32 %v112_v43 }
 0x156   :  { %vm82_vm7 = vmor %vm80_vm6, %vm81_vm5 }
 0x157   :  { %v77_v47 = vsub.f32 1.0, %v76_v45 }
 0x159   :  { %v78_v50 = vmul.f32 %v112_v43, %v77_v47 }
 0x15b   :  { %v79_v53 = vadd.f32 %v112_v43, %v78_v50 }
 0x15d   :  { %v83_v56 = vsel %vm82_vm7, %v112_v43, %v79_v53 }
 0x15e   :  { %v88_v58 = vsel %vm85_vm8, %v87_v54, %v83_v56 }
 0x15f   :  { %v90_v60 = vmul.f32 %v88_v58, %v62_v55  ;;  %v89_v61 = vmul.f32 %v88_v58, %v55_v59 }
 0x161   :  { %v93_v62 = vrot.slane %v90_v60, 7 }
 0x163   :  { %v95_v63 = vsel %vm94_vm9, %v89_v61, %v93_v62 }
 0x164   :  { %101 = vst.msk [vmem:[%s135_s1] sm:$0x3] %vm99_vm10, %v95_v63 }

// kernel: unpitched_channels_encoder_forward.7
= control target key start
LH: loop header
LB: loop body
LE: loop exit
PB: predicated region body
PF: predicated region fallthrough
CT: control target
= control target key end

     0   :  { %v506_v2 = vmov 0   ;;  %v17_v17 = vlaneseq  ;;  %s508_s17 = smov 16   ;;  %s509_s18 = smov 32   ;;  %vm29_vm11 = vcmask 130048   ;;  %s651_s1 = inlined_call_operand.vmem [shape: bf16[2,16,64], index: 1, kind: input, shape index: {}]   ;;  %s652_s0 = inlined_call_operand.vmem [shape: f32[2,3,2,64], index: 0, kind: input, shape index: {}]   ;;  %s653_s2 = inlined_call_operand.vmem [shape: f32[2,96], index: 2, kind: output, shape index: {}]  }
   0x1   :  { %v450_v0 = vld [vmem:[%s651_s1] sm:$0xff]  ;;  %v451_v1 = vld [vmem:[%s651_s1 + $0x8] sm:$0xff]  ;;  %s507_s1 = smov 96   ;;  %s510_s19 = smov 80  }
   0x2   :  { %40 = vmatpush.bf16.msra.mxu0 %v450_v0  ;;  %62 = vmatpush.bf16.msra.mxu1 %v451_v1  ;;  %v22_v3 = vld [vmem:[%s652_s0] sm:$0x3]  ;;  %v431_v4 = vld [vmem:[%s652_s0 + $0xa] sm:$0x3]  ;;  %v18_v18 = vand.u32 127, %v17_v17  ;;  %s511_s29 = smov 112  }
   0x3   :  { %173 = vmatpush.bf16.msra.mxu2 %v450_v0  ;;  %196 = vmatpush.bf16.msra.mxu3 %v451_v1 }
   0x4   :  { %vm19_vm0 = vcmp.ge.s32.totalorder %v18_v18, 32  ;;  %vm20_vm1 = vcmp.lt.s32.totalorder %v18_v18, 48 }
   0x5   :  { %41 = vmatmul.bf16.vlgmr.msra.gmra.mxu0 %v506_v2  ;;  %63 = vmatmul.bf16.vlgmr.msra.gmra.mxu1 %v506_v2  ;;  %vm539_vm3 = vmand %vm19_vm0, %vm20_vm1 }
   0x6   :  { %303 = vmatpush.bf16.msrb.mxu0 %v450_v0  ;;  %326 = vmatpush.bf16.msrb.mxu1 %v451_v1  ;;  %v438_v0 = vld [vmem:[%s652_s0 + $0x2] sm:$0x3] }
  0x82   :  { %v42_v5 = vpop.f32.mrf.mxu0  ;;  %v64_v6 = vpop.f32.mrf.mxu1 }
  0x83   :  { %v46_v7 = vadd.f32 %v42_v5, %v22_v3  ;;  %v68_v8 = vadd.f32 %v431_v4, %v64_v6  ;;  %v440_v4 = vld [vmem:[%s652_s0 + $0x8] sm:$0x3] }
  0x85   :  { %v436_v9 = vmul.f32 -1.442695, %v46_v7  ;;  %v437_v10 = vmul.f32 -1.442695, %v68_v8 }
  0x87   :  { %458 = vpow2.f32 %v436_v9 }
  0x88   :  { %460 = vpow2.f32 %v437_v10 }
  0x8a   :  { %v44_v11 = vpop.f32.mrf.mxu0  ;;  %v66_v12 = vpop.f32.mrf.mxu1 }
  0x8d   :  { %v459_v13 = vpop.eup %458 }
  0x8e   :  { %v461_v14 = vpop.eup %460  ;;  %v73_v15 = vadd.f32 1.0, %v459_v13 }
  0x8f   :  { %v111_v16 = vadd.f32 1.0, %v461_v14 }
  0x90   :  { %462 = vrcp.f32 %v73_v15  ;;  %v85_v24 = vand.u32 2147483648, %v73_v15  ;;  %v83_v27 = vand.u32 2147483647, %v73_v15  ;;  %vm79_vm4 = vweird.f32 %v73_v15 }
  0x91   :  { %464 = vrcp.f32 %v111_v16  ;;  %vm117_vm6 = vweird.f32 %v111_v16  ;;  %v123_v36 = vand.u32 2147483648, %v111_v16  ;;  %v121_v38 = vand.u32 2147483647, %v111_v16 }
  0x92   :  { %466 = vtanh.f32 %v46_v7  ;;  %v86_v31 = vor.u32 1.1754944e-38, %v85_v24  ;;  %vm84_vm7 = vcmp.eq.f32.partialorder %v83_v27, 8.507059e+37 }
  0x93   :  { %468 = vtanh.f32 %v68_v8  ;;  %v124_v40 = vor.u32 1.1754944e-38, %v123_v36  ;;  %vm122_vm10 = vcmp.eq.f32.partialorder %v121_v38, 8.507059e+37 }
  0x96   :  { %v463_v19 = vpop.eup %462 }
  0x97   :  { %v465_v20 = vpop.eup %464  ;;  %v75_v21 = vmul.f32 %v463_v19, %v73_v15  ;;  %vm80_vm2 = vweird.f32 %v463_v19 }
  0x98   :  { %v113_v22 = vmul.f32 %v465_v20, %v111_v16  ;;  %vm81_vm5 = vmor %vm79_vm4, %vm80_vm2  ;;  %vm118_vm8 = vweird.f32 %v465_v20  ;;  %v467_v34 = vpop.eup %466 }
  0x99   :  { %v76_v23 = vsub.f32 1.0, %v75_v21  ;;  %vm119_vm9 = vmor %vm117_vm6, %vm118_vm8  ;;  %v469_v42 = vpop.eup %468 }
  0x9a   :  { %v114_v25 = vsub.f32 1.0, %v113_v22 }
  0x9b   :  { %v77_v26 = vmul.f32 %v463_v19, %v76_v23 }
  0x9c   :  { %v115_v28 = vmul.f32 %v465_v20, %v114_v25 }
  0x9d   :  { %v78_v30 = vadd.f32 %v463_v19, %v77_v26 }
  0x9e   :  { %v116_v33 = vadd.f32 %v465_v20, %v115_v28 }
  0x9f   :  { %v82_v32 = vsel %vm81_vm5, %v463_v19, %v78_v30 }
  0xa0   :  { %v87_v35 = vsel %vm84_vm7, %v86_v31, %v82_v32  ;;  %v120_v39 = vsel %vm119_vm9, %v465_v20, %v116_v33 }
  0xa1   :  { %v89_v37 = vsel %vm539_vm3, %v467_v34, %v87_v35  ;;  %v125_v41 = vsel %vm122_vm10, %v124_v40, %v120_v39 }
  0xa2   :  { %92 = vrot.lane.b32.xlu0 %v89_v37, %s507_s1  ;;  %v127_v43 = vsel %vm539_vm3, %v469_v42, %v125_v41  ;;  %v90_v48 = vmul.f32 0.0, %v89_v37 }
  0xa3   :  { %v128_v51 = vmul.f32 0.0, %v127_v43 }
  0xaa   :  { %130 = vrot.lane.b32.xlu0 %v127_v43, %s507_s1 }
 0x114   :  { %v93_v44 = vpop.permute.xlu0 %92 }
 0x115   :  { %v95_v45 = vmul.f32 %v93_v44, %v89_v37 }
 0x117   :  { %97 = vrot.lane.b32.xlu1 %v95_v45, %s508_s17 }
 0x11c   :  { %v131_v46 = vpop.permute.xlu0 %130 }
 0x11d   :  { %v133_v47 = vmul.f32 %v131_v46, %v127_v43 }
 0x11f   :  { %135 = vrot.lane.b32.xlu1 %v133_v47, %s508_s17 }
 0x189   :  { %v98_v49 = vpop.permute.xlu1 %97 }
 0x18a   :  { %v551_v50 = vadd.f32 %v98_v49, %v90_v48 }
 0x18c   :  { %470 = vtanh.f32 %v551_v50 }
 0x191   :  { %v136_v52 = vpop.permute.xlu1 %135 }
 0x192   :  { %v471_v53 = vpop.eup %470  ;;  %v554_v54 = vadd.f32 %v136_v52, %v128_v51 }
 0x193   :  { %103 = vrot.lane.b32.xlu2 %v471_v53, %s509_s18 }
 0x194   :  { %472 = vtanh.f32 %v554_v54 }
 0x19a   :  { %v473_v55 = vpop.eup %472 }
 0x19b   :  { %141 = vrot.lane.b32.xlu2 %v473_v55, %s509_s18 }
 0x1ed   :  { %v104_v56 = vpop.permute.xlu2 %103 }
 0x1ee   :  { %v559_v57 = vmul.f32 %v104_v56, %v89_v37 }
 0x1f0   :  { %v159_v58 = vpack.c.bf16 %v559_v57, %v559_v57 }
 0x1f2   :  { %161 = vrot.lane.b32.xlu0 %v159_v58, %s510_s19 }
 0x1f5   :  { %v142_v59 = vpop.permute.xlu2 %141 }
 0x1f6   :  { %v564_v60 = vmul.f32 %v142_v59, %v127_v43 }
 0x1f8   :  { %v182_v61 = vpack.c.bf16 %v564_v60, %v564_v60 }
 0x1fa   :  { %184 = vrot.lane.b32.xlu1 %v182_v61, %s510_s19  ;;  %v444_v61 = vld [vmem:[%s652_s0 + $0x4] sm:$0x3] }
 0x264   :  { %v162_v62 = vpop.permute.xlu0 %161 }
 0x265   :  { %439 = vmatmul.msk.bf16.vlgmr.msra.gmra.mxu2 %vm29_vm11, %v162_v62 }
 0x26c   :  { %v185_v63 = vpop.permute.xlu1 %184 }
 0x26d   :  { %441 = vmatmul.msk.bf16.vlgmr.msra.gmra.mxu3 %vm29_vm11, %v185_v63 }
 0x2e8   :  { %v175_v1 = vpop.f32.mrf.mxu2 }
 0x2e9   :  { %v179_v2 = vadd.f32 %v438_v0, %v175_v1 }
 0x2eb   :  { %v442_v3 = vmul.f32 -1.442695, %v179_v2 }
 0x2ed   :  { %474 = vpow2.f32 %v442_v3 }
 0x2f0   :  { %v177_v5 = vpop.f32.mrf.mxu2  ;;  %v198_v6 = vpop.f32.mrf.mxu3 }
 0x2f1   :  { %v202_v7 = vadd.f32 %v440_v4, %v198_v6 }
 0x2f3   :  { %v475_v8 = vpop.eup %474  ;;  %v443_v9 = vmul.f32 -1.442695, %v202_v7 }
 0x2f4   :  { %v207_v10 = vadd.f32 1.0, %v475_v8 }
 0x2f5   :  { %476 = vpow2.f32 %v443_v9 }
 0x2f6   :  { %478 = vrcp.f32 %v207_v10  ;;  %v219_v17 = vand.u32 2147483648, %v207_v10  ;;  %v217_v19 = vand.u32 2147483647, %v207_v10  ;;  %vm213_vm13 = vweird.f32 %v207_v10 }
 0x2f8   :  { %v200_v11 = vpop.f32.mrf.mxu3  ;;  %v220_v22 = vor.u32 1.1754944e-38, %v219_v17  ;;  %vm218_vm15 = vcmp.eq.f32.partialorder %v217_v19, 8.507059e+37 }
 0x2fb   :  { %v477_v12 = vpop.eup %476 }
 0x2fc   :  { %v479_v13 = vpop.eup %478  ;;  %v245_v14 = vadd.f32 1.0, %v477_v12 }
 0x2fd   :  { %v209_v15 = vmul.f32 %v479_v13, %v207_v10  ;;  %vm214_vm12 = vweird.f32 %v479_v13 }
 0x2fe   :  { %480 = vrcp.f32 %v245_v14  ;;  %vm215_vm14 = vmor %vm213_vm13, %vm214_vm12  ;;  %v257_v30 = vand.u32 2147483648, %v245_v14  ;;  %v255_v32 = vand.u32 2147483647, %v245_v14  ;;  %vm251_vm1 = vweird.f32 %v245_v14 }
 0x2ff   :  { %v210_v16 = vsub.f32 1.0, %v209_v15  ;;  %482 = vtanh.f32 %v179_v2  ;;  %vm155_vm13 = vcmask 779904  }
 0x300   :  { %484 = vtanh.f32 %v202_v7  ;;  %v258_v34 = vor.u32 1.1754944e-38, %v257_v30  ;;  %vm256_vm4 = vcmp.eq.f32.partialorder %v255_v32, 8.507059e+37 }
 0x301   :  { %v211_v18 = vmul.f32 %v479_v13, %v210_v16 }
 0x303   :  { %v212_v20 = vadd.f32 %v479_v13, %v211_v18 }
 0x304   :  { %v481_v21 = vpop.eup %480 }
 0x305   :  { %v216_v23 = vsel %vm215_vm14, %v479_v13, %v212_v20  ;;  %v247_v24 = vmul.f32 %v481_v21, %v245_v14  ;;  %v483_v25 = vpop.eup %482  ;;  %vm252_vm0 = vweird.f32 %v481_v21  ;;  %v446_v14 = vld [vmem:[%s652_s0 + $0x6] sm:$0x3]  ;;  %vm283_vm14 = vcmask 386304  }
 0x306   :  { %v221_v26 = vsel %vm218_vm15, %v220_v22, %v216_v23  ;;  %vm253_vm2 = vmor %vm251_vm1, %vm252_vm0  ;;  %v485_v36 = vpop.eup %484  ;;  %vm285_vm15 = vcmask 517504   ;;  %vm413_vm0 = vcmask 648704   ;;  %vm419_vm1 = vcmask 255104  }
 0x307   :  { %v223_v27 = vsel %vm539_vm3, %v483_v25, %v221_v26  ;;  %v248_v28 = vsub.f32 1.0, %v247_v24 }
 0x308   :  { %226 = vrot.lane.b32.xlu2 %v223_v27, %s507_s1  ;;  %v224_v43 = vmul.f32 %v223_v27, %v551_v50 }
 0x309   :  { %v249_v31 = vmul.f32 %v481_v21, %v248_v28 }
 0x30b   :  { %v250_v33 = vadd.f32 %v481_v21, %v249_v31 }
 0x30d   :  { %v254_v35 = vsel %vm253_vm2, %v481_v21, %v250_v33 }
 0x30e   :  { %v259_v37 = vsel %vm256_vm4, %v258_v34, %v254_v35 }
 0x30f   :  { %v261_v38 = vsel %vm539_vm3, %v485_v36, %v259_v37 }
 0x310   :  { %264 = vrot.lane.b32.xlu0 %v261_v38, %s507_s1  ;;  %v262_v46 = vmul.f32 %v261_v38, %v554_v54 }
 0x362   :  { %v227_v39 = vpop.permute.xlu2 %226 }
 0x363   :  { %v229_v40 = vmul.f32 %v227_v39, %v223_v27 }
 0x365   :  { %231 = vrot.lane.b32.xlu1 %v229_v40, %s508_s17 }
 0x382   :  { %v265_v41 = vpop.permute.xlu0 %264 }
 0x383   :  { %v267_v42 = vmul.f32 %v265_v41, %v261_v38 }
 0x385   :  { %269 = vrot.lane.b32.xlu2 %v267_v42, %s508_s17 }
 0x3d7   :  { %v232_v44 = vpop.permute.xlu1 %231 }
 0x3d8   :  { %v586_v45 = vadd.f32 %v232_v44, %v224_v43 }
 0x3da   :  { %486 = vtanh.f32 %v586_v45 }
 0x3df   :  { %v270_v47 = vpop.permute.xlu2 %269 }
 0x3e0   :  { %v487_v48 = vpop.eup %486  ;;  %v590_v49 = vadd.f32 %v270_v47, %v262_v46 }
 0x3e1   :  { %237 = vrot.lane.b32.xlu0 %v487_v48, %s509_s18 }
 0x3e2   :  { %488 = vtanh.f32 %v590_v49 }
 0x3e8   :  { %v489_v51 = vpop.eup %488 }
 0x3e9   :  { %275 = vrot.lane.b32.xlu1 %v489_v51, %s509_s18 }
 0x453   :  { %v238_v52 = vpop.permute.xlu0 %237 }
 0x454   :  { %v595_v50 = vmul.f32 %v238_v52, %v223_v27 }
 0x456   :  { %v289_v53 = vpack.c.bf16 %v595_v50, %v595_v50 }
 0x458   :  { %291 = vrot.lane.b32.xlu2 %v289_v53, %s510_s19 }
 0x45b   :  { %v276_v54 = vpop.permute.xlu1 %275 }
 0x45c   :  { %v600_v55 = vmul.f32 %v276_v54, %v261_v38 }
 0x45e   :  { %v312_v56 = vpack.c.bf16 %v600_v55, %v600_v55 }
 0x460   :  { %314 = vrot.lane.b32.xlu0 %v312_v56, %s510_s19 }
 0x4b2   :  { %v292_v58 = vpop.permute.xlu2 %291 }
 0x4b3   :  { %445 = vmatmul.msk.bf16.vlgmr.msrb.gmra.mxu0 %vm29_vm11, %v292_v58 }
 0x4d2   :  { %v315_v59 = vpop.permute.xlu0 %314 }
 0x4d3   :  { %447 = vmatmul.msk.bf16.vlgmr.msrb.gmra.mxu1 %vm29_vm11, %v315_v59 }
 0x530   :  { %v305_v62 = vpop.f32.mrf.mxu0 }
 0x531   :  { %v309_v63 = vadd.f32 %v444_v61, %v305_v62 }
 0x533   :  { %v448_v0 = vmul.f32 -1.442695, %v309_v63 }
 0x535   :  { %490 = vpow2.f32 %v448_v0 }
 0x538   :  { %v307_v1 = vpop.f32.mrf.mxu0 }
 0x53b   :  { %v491_v2 = vpop.eup %490 }
 0x53c   :  { %v337_v3 = vadd.f32 1.0, %v491_v2 }
 0x53e   :  { %492 = vrcp.f32 %v337_v3  ;;  %v349_v7 = vand.u32 2147483648, %v337_v3  ;;  %v347_v9 = vand.u32 2147483647, %v337_v3  ;;  %vm343_vm6 = vweird.f32 %v337_v3 }
 0x53f   :  { %494 = vtanh.f32 %v309_v63 }
 0x540   :  { %v350_v11 = vor.u32 1.1754944e-38, %v349_v7  ;;  %vm348_vm8 = vcmp.eq.f32.partialorder %v347_v9, 8.507059e+37 }
 0x544   :  { %v493_v4 = vpop.eup %492 }
 0x545   :  { %v339_v5 = vmul.f32 %v493_v4, %v337_v3  ;;  %vm344_vm5 = vweird.f32 %v493_v4  ;;  %v495_v13 = vpop.eup %494 }
 0x546   :  { %vm345_vm7 = vmor %vm343_vm6, %vm344_vm5 }
 0x547   :  { %v340_v6 = vsub.f32 1.0, %v339_v5 }
 0x549   :  { %v341_v8 = vmul.f32 %v493_v4, %v340_v6 }
 0x54b   :  { %v342_v10 = vadd.f32 %v493_v4, %v341_v8 }
 0x54d   :  { %v346_v12 = vsel %vm345_vm7, %v493_v4, %v342_v10 }
 0x54e   :  { %v351_v15 = vsel %vm348_vm8, %v350_v11, %v346_v12 }
 0x54f   :  { %v353_v16 = vsel %vm539_vm3, %v495_v13, %v351_v15 }
 0x550   :  { %v328_v17 = vpop.f32.mrf.mxu1  ;;  %356 = vrot.lane.b32.xlu1 %v353_v16, %s507_s1  ;;  %v354_v40 = vmul.f32 %v353_v16, %v586_v45 }
 0x551   :  { %v332_v18 = vadd.f32 %v446_v14, %v328_v17 }
 0x553   :  { %v449_v19 = vmul.f32 -1.442695, %v332_v18 }
 0x555   :  { %496 = vpow2.f32 %v449_v19 }
 0x558   :  { %v330_v20 = vpop.f32.mrf.mxu1 }
 0x55b   :  { %v497_v21 = vpop.eup %496 }
 0x55c   :  { %v375_v22 = vadd.f32 1.0, %v497_v21 }
 0x55e   :  { %498 = vrcp.f32 %v375_v22  ;;  %v387_v26 = vand.u32 2147483648, %v375_v22  ;;  %v385_v28 = vand.u32 2147483647, %v375_v22  ;;  %vm381_vm10 = vweird.f32 %v375_v22 }
 0x55f   :  { %500 = vtanh.f32 %v332_v18 }
 0x560   :  { %v388_v31 = vor.u32 1.1754944e-38, %v387_v26  ;;  %vm386_vm12 = vcmp.eq.f32.partialorder %v385_v28, 8.507059e+37 }
 0x564   :  { %v499_v23 = vpop.eup %498 }
 0x565   :  { %v377_v24 = vmul.f32 %v499_v23, %v375_v22  ;;  %vm382_vm9 = vweird.f32 %v499_v23  ;;  %v501_v33 = vpop.eup %500 }
 0x566   :  { %vm383_vm11 = vmor %vm381_vm10, %vm382_vm9 }
 0x567   :  { %v378_v25 = vsub.f32 1.0, %v377_v24 }
 0x569   :  { %v379_v27 = vmul.f32 %v499_v23, %v378_v25 }
 0x56b   :  { %v380_v30 = vadd.f32 %v499_v23, %v379_v27 }
 0x56d   :  { %v384_v32 = vsel %vm383_vm11, %v499_v23, %v380_v30 }
 0x56e   :  { %v389_v34 = vsel %vm386_vm12, %v388_v31, %v384_v32 }
 0x56f   :  { %v391_v35 = vsel %vm539_vm3, %v501_v33, %v389_v34  ;;  %vm149_vm3 = vcmask 123904  }
 0x570   :  { %394 = vrot.lane.b32.xlu2 %v391_v35, %s507_s1  ;;  %v392_v29 = vmul.f32 %v391_v35, %v590_v49 }
 0x5c2   :  { %v357_v36 = vpop.permute.xlu1 %356 }
 0x5c3   :  { %v359_v37 = vmul.f32 %v357_v36, %v353_v16 }
 0x5c5   :  { %361 = vrot.lane.b32.xlu0 %v359_v37, %s508_s17 }
 0x5ca   :  { %v395_v38 = vpop.permute.xlu2 %394 }
 0x5cb   :  { %v397_v39 = vmul.f32 %v395_v38, %v391_v35 }
 0x5cd   :  { %399 = vrot.lane.b32.xlu1 %v397_v39, %s508_s17 }
 0x5d5   :  { %146 = vrot.lane.b32.xlu1 %v559_v57, %s510_s19 }
 0x637   :  { %v362_v41 = vpop.permute.xlu0 %361 }
 0x638   :  { %v364_v42 = vadd.f32 %v362_v41, %v354_v40 }
 0x63a   :  { %502 = vtanh.f32 %v364_v42 }
 0x63f   :  { %v400_v43 = vpop.permute.xlu1 %399 }
 0x640   :  { %v503_v44 = vpop.eup %502  ;;  %v402_v46 = vadd.f32 %v400_v43, %v392_v29 }
 0x641   :  { %367 = vrot.lane.b32.xlu2 %v503_v44, %s509_s18 }
 0x642   :  { %504 = vtanh.f32 %v402_v46 }
 0x647   :  { %v147_v47 = vpop.permute.xlu1 %146 }
 0x648   :  { %v505_v48 = vpop.eup %504  ;;  %150 = vst.msk [vmem:[%s653_s2] sm:$0x3] %vm149_vm3, %v147_v47 }
 0x649   :  { %152 = vrot.lane.b32.xlu2 %v564_v60, %s509_s18  ;;  %405 = vrot.lane.b32.xlu0 %v505_v48, %s509_s18 }
 0x651   :  { %280 = vrot.lane.b32.xlu0 %v595_v50, %s511_s29 }
 0x69b   :  { %v368_v57 = vpop.permute.xlu2 %367 }
 0x69c   :  { %v370_v45 = vmul.f32 %v368_v57, %v353_v16 }
 0x69e   :  { %410 = vrot.lane.b32.xlu1 %v370_v45, %s508_s17 }
 0x6a3   :  { %v153_v49 = vpop.permute.xlu2 %152 }
 0x6a4   :  { %156 = vst.msk [vmem:[%s653_s2] sm:$0x3] %vm155_vm13, %v153_v49 }
 0x6bb   :  { %v406_v51 = vpop.permute.xlu0 %405 }
 0x6bc   :  { %v408_v52 = vmul.f32 %v406_v51, %v391_v35 }
 0x6be   :  { %416 = vrot.lane.b32.xlu2 %v408_v52, %s507_s1 }
 0x6c3   :  { %v281_v60 = vpop.permute.xlu0 %280 }
 0x6c4   :  { %284 = vst.msk [vmem:[%s653_s2] sm:$0x3] %vm283_vm14, %v281_v60 }
 0x6c5   :  { %286 = vst.msk [vmem:[%s653_s2] sm:$0x3] %vm285_vm15, %v600_v55 }
 0x710   :  { %v411_v50 = vpop.permute.xlu1 %410 }
 0x711   :  { %414 = vst.msk [vmem:[%s653_s2] sm:$0x3] %vm413_vm0, %v411_v50 }
 0x718   :  { %v417_v53 = vpop.permute.xlu2 %416 }
 0x719   :  { %420 = vst.msk [vmem:[%s653_s2] sm:$0x3] %vm419_vm1, %v417_v53 }

</bundles_post_ra>
